<compile_context>
chip_gen: v6e
topology: v6e:2x2x1
jax: 0.10.0
libtpu: 0.0.40
codegen_flags: <defaults>
</compile_context>

<pallas_src>
import functools
import math

import jax
import jax.numpy as jnp
from jax.experimental import pallas as pl
from jax.experimental.pallas import tpu as pltpu


# ----------------------------------------------------------------------------
# small helpers
# ----------------------------------------------------------------------------

def _round_up(x, m):
    return (x + m - 1) // m * m


def _seq_tile(s):
    # one full-extent tile for small/medium sequences; 256-row tiles otherwise
    # (caps padding waste well below the previous 512-row tiles).
    return _round_up(s, 8) if s <= 1024 else 256


def _cparams(dims):
    # 32 MiB scoped VMEM: ample for these tiles, leaves headroom on v7x (64 MiB).
    return pltpu.CompilerParams(dimension_semantics=dims,
                                vmem_limit_bytes=32 * 1024 * 1024)


def _ln(z, g, b, eps=1e-5):
    mean = jnp.mean(z, axis=-1, keepdims=True)
    var = jnp.mean((z - mean) ** 2, axis=-1, keepdims=True)
    return (z - mean) * jax.lax.rsqrt(var + eps) * g + b


def _leaky(z):                              # nn.LeakyReLU default slope 0.01
    return jnp.where(z >= 0.0, z, 0.01 * z)


# ----------------------------------------------------------------------------
# kernel 1: GeneEncoder.LN + ValueEncoder.LN + add  ->  bf16 residual stream
# ----------------------------------------------------------------------------

def _encode_kernel(ge_ref, ve_ref, g1_ref, b1_ref, g2_ref, b2_ref, o_ref):
    ge = ge_ref[0]                                            # (ts, D) f32
    ve = ve_ref[0]
    o_ref[0] = (_ln(ge, g1_ref[...], b1_ref[...]) +
                _ln(ve, g2_ref[...], b2_ref[...])).astype(o_ref.dtype)


def pallas_encode(gene_e, val_e, gene_ln, val_ln, *, ts):
    B, S_pad, D = gene_e.shape
    g1, b1 = gene_ln
    g2, b2 = val_ln
    row = pl.BlockSpec((1, ts, D), lambda b, s: (b, s, 0))
    vec = pl.BlockSpec((1, D), lambda b, s: (0, 0))
    return pl.pallas_call(
        _encode_kernel,
        out_shape=jax.ShapeDtypeStruct((B, S_pad, D), jnp.bfloat16),
        grid=(B, S_pad // ts),
        in_specs=[row, row, vec, vec, vec, vec],
        out_specs=row,
        compiler_params=_cparams(("parallel", "parallel")),
    )(gene_e, val_e, g1, b1, g2, b2)


# ----------------------------------------------------------------------------
# kernel 2: one fused encoder layer
#   QKV -> per-head attention (full softmax over in-VMEM keys)
#       -> out_proj + residual + LN1 -> FFN + residual + LN2
# ----------------------------------------------------------------------------

def _layer_kernel(xf_ref, xq_ref, bias_ref,
                  wqkv_ref, bqkv_ref, wo_ref, bo_ref, g1_ref, beta1_ref,
                  w1_ref, b1_ref, w2_ref, b2_ref, g2_ref, beta2_ref,
                  o_ref, *, nhead, scale):
    xf = xf_ref[0]                           # (S_pad, D) bf16 — full sequence
    xq = xq_ref[0]                           # (ts, D)    bf16 — this q tile
    D = xq.shape[-1]
    Dh = D // nhead
    bias = bias_ref[0]                       # (1, S_pad) f32 additive key mask

    # --- fused QKV projection (lane-dense, packed weights) ---------------
    q = (jnp.dot(xq, wqkv_ref[:, :D], preferred_element_type=jnp.float32)
         + bqkv_ref[:, :D])                                   # (ts, D) f32
    kv = (jnp.dot(xf, wqkv_ref[:, D:], preferred_element_type=jnp.float32)
          + bqkv_ref[:, D:])                                  # (S_pad, 2D) f32
    k = kv[:, :D].astype(jnp.bfloat16)
    v = kv[:, D:].astype(jnp.bfloat16)

    # --- per-head attention (keys fully resident in VMEM -> plain softmax)
    outs = []
    for h in range(nhead):
        lo, hi = h * Dh, (h + 1) * Dh
        qh = q[:, lo:hi].astype(jnp.bfloat16)                 # (ts, Dh)
        kh = k[:, lo:hi]                                      # (S_pad, Dh)
        vh = v[:, lo:hi]
        s = jnp.einsum("qd,kd->qk", qh, kh,
                       preferred_element_type=jnp.float32) * scale + bias
        m = jnp.max(s, axis=-1, keepdims=True)
        p = jnp.exp(s - m)
        l = jnp.sum(p, axis=-1, keepdims=True)
        oh = jnp.einsum("qk,kd->qd", p.astype(jnp.bfloat16), vh,
                        preferred_element_type=jnp.float32)
        outs.append(oh * pl.reciprocal(l, approx=True))
    attn = jnp.concatenate(outs, axis=-1)                     # (ts, D) f32

    # --- out_proj + residual + LayerNorm1 --------------------------------
    y = (jnp.dot(attn.astype(jnp.bfloat16), wo_ref[...],
                 preferred_element_type=jnp.float32) + bo_ref[...])
    r1 = _ln(xq.astype(jnp.float32) + y, g1_ref[...], beta1_ref[...])

    # --- FFN (linear1 + ReLU + linear2) + residual + LayerNorm2 -----------
    h1 = jnp.maximum(
        jnp.dot(r1.astype(jnp.bfloat16), w1_ref[...],
                preferred_element_type=jnp.float32) + b1_ref[...], 0.0)
    y2 = (jnp.dot(h1.astype(jnp.bfloat16), w2_ref[...],
                  preferred_element_type=jnp.float32) + b2_ref[...])
    o_ref[0] = _ln(r1 + y2, g2_ref[...], beta2_ref[...]).astype(o_ref.dtype)


def pallas_layer(x, attn_bias, lyr, *, nhead, ts):
    B, S_pad, D = x.shape
    scale = 1.0 / math.sqrt(D // nhead)
    full_seq = pl.BlockSpec((1, S_pad, D), lambda b, s: (b, 0, 0))
    row = pl.BlockSpec((1, ts, D), lambda b, s: (b, s, 0))
    bias_spec = pl.BlockSpec((1, 1, S_pad), lambda b, s: (b, 0, 0))

    # NOTE: weight blocks are grid-invariant; at real scGPT sizes one would set
    # pipeline_mode=pl.Buffered(1) on them to avoid pointless double-buffering.
    def full(arr):
        return pl.BlockSpec(arr.shape, lambda b, s: (0,) * arr.ndim)

    g1, beta1 = lyr["ln1"]
    g2, beta2 = lyr["ln2"]
    return pl.pallas_call(
        functools.partial(_layer_kernel, nhead=nhead, scale=scale),
        out_shape=jax.ShapeDtypeStruct((B, S_pad, D), jnp.bfloat16),
        grid=(B, S_pad // ts),
        in_specs=[full_seq, row, bias_spec,
                  full(lyr["wqkv"]), full(lyr["bqkv"]),
                  full(lyr["wo"]), full(lyr["bo"]), full(g1), full(beta1),
                  full(lyr["w1"]), full(lyr["b1"]),
                  full(lyr["w2"]), full(lyr["b2"]), full(g2), full(beta2)],
        out_specs=row,
        compiler_params=_cparams(("parallel", "parallel")),
    )(x, x, attn_bias,
      lyr["wqkv"], lyr["bqkv"], lyr["wo"], lyr["bo"], g1, beta1,
      lyr["w1"], lyr["b1"], lyr["w2"], lyr["b2"], g2, beta2)


# ----------------------------------------------------------------------------
# kernel 3: ExprDecoder fused with masked cross-entropy (logits never hit HBM)
# ----------------------------------------------------------------------------

def _decode_ce_kernel(x_ref, w1_ref, b1_ref, w2_ref, b2_ref, w3_ref, b3_ref,
                      lab_ref, mask_ref, loss_ref, acc_sc, *, n_bins):
    b = pl.program_id(0)
    s = pl.program_id(1)

    @pl.when((b == 0) & (s == 0))
    def _():
        acc_sc[0] = 0.0
        acc_sc[1] = 0.0

    x = x_ref[0]                                              # (ts, D) bf16
    h = _leaky(jnp.dot(x, w1_ref[...],
                       preferred_element_type=jnp.float32) + b1_ref[...])
    h = _leaky(jnp.dot(h.astype(jnp.bfloat16), w2_ref[...],
                       preferred_element_type=jnp.float32) + b2_ref[...])
    logits = (jnp.dot(h.astype(jnp.bfloat16), w3_ref[...],
                      preferred_element_type=jnp.float32) + b3_ref[...])

    col = jax.lax.broadcasted_iota(jnp.int32, logits.shape, 1)
    logits = jnp.where(col < n_bins, logits, -1e30)           # mask padded classes
    labels = lab_ref[0]                                       # (ts, 1) int32
    mask = mask_ref[0]                                        # (ts, 1) f32

    m = jnp.max(logits, axis=-1, keepdims=True)
    lse = jnp.log(jnp.sum(jnp.exp(logits - m), axis=-1, keepdims=True)) + m
    true_logit = jnp.sum(jnp.where(col == labels, logits, 0.0),
                         axis=-1, keepdims=True)
    ce = lse - true_logit

    acc_sc[0] += jnp.sum(ce * mask)
    acc_sc[1] += jnp.sum(mask)

    @pl.when((b == pl.num_programs(0) - 1) & (s == pl.num_programs(1) - 1))
    def _():
        # NOTE: NaN if no position is masked anywhere (same as nn.CrossEntropyLoss
        # on an empty batch); the caller guarantees >= 1 masked position.
        loss_ref[...] = jnp.full((1, 1), acc_sc[0] / acc_sc[1], jnp.float32)


def pallas_decode_ce(x, dec, labels, mask, *, n_bins, ts):
    B, S_pad, D = x.shape
    row = pl.BlockSpec((1, ts, D), lambda b, s: (b, s, 0))
    colv = pl.BlockSpec((1, ts, 1), lambda b, s: (b, s, 0))

    def full(arr):
        return pl.BlockSpec(arr.shape, lambda b, s: (0,) * arr.ndim)

    return pl.pallas_call(
        functools.partial(_decode_ce_kernel, n_bins=n_bins),
        out_shape=jax.ShapeDtypeStruct((1, 1), jnp.float32),
        grid=(B, S_pad // ts),
        in_specs=[row, full(dec["w1"]), full(dec["b1"]),
                  full(dec["w2"]), full(dec["b2"]),
                  full(dec["w3"]), full(dec["b3"]), colv, colv],
        out_specs=pl.BlockSpec((1, 1), lambda b, s: (0, 0)),
        scratch_shapes=[pltpu.SMEM((2,), jnp.float32)],
        compiler_params=_cparams(("arbitrary", "arbitrary")),
    )(x, dec["w1"], dec["b1"], dec["w2"], dec["b2"], dec["w3"], dec["b3"],
      labels, mask)


# ----------------------------------------------------------------------------
# parameters (deterministic synthetic init mirroring the module's shapes)
# ----------------------------------------------------------------------------

def init_params(key, n_token, d_model, nhead, dim_ff, nlayers, n_bins):
    keys = iter(jax.random.split(key, 128))

    def nxt():
        return next(keys)

    def lin(in_f, out_f):
        w = jax.random.normal(nxt(), (in_f, out_f), jnp.float32) / math.sqrt(in_f)
        b = jax.random.normal(nxt(), (out_f,), jnp.float32) * 0.01
        return w, b

    ones = jnp.ones((d_model,), jnp.float32)
    zeros = jnp.zeros((d_model,), jnp.float32)

    params = {}
    # GeneEncoder: embedding re-initialized uniform(-0.1, 0.1) by init_weights()
    params["gene_emb"] = jax.random.uniform(
        nxt(), (n_token, d_model), jnp.float32, -0.1, 0.1)
    params["gene_ln"] = (ones, zeros)
    # ValueEncoder: padding_idx=0 row is zero
    val_emb = jax.random.normal(nxt(), (n_bins + 1, d_model), jnp.float32) * 0.02
    params["val_emb"] = val_emb.at[0].set(0.0)
    params["val_ln"] = (ones, zeros)

    layers = []
    for _ in range(nlayers):
        wqkv, bqkv = lin(d_model, 3 * d_model)
        wo, bo = lin(d_model, d_model)
        w1, b1 = lin(d_model, dim_ff)
        w2, b2 = lin(dim_ff, d_model)
        layers.append(dict(wqkv=wqkv, bqkv=bqkv, wo=wo, bo=bo,
                           ln1=(ones, zeros), ln2=(ones, zeros),
                           w1=w1, b1=b1, w2=w2, b2=b2))
    params["layers"] = layers

    params["dec"] = [lin(d_model, d_model),
                     lin(d_model, d_model),
                     lin(d_model, n_bins)]
    return params


def prepare_params(raw, *, d_model, n_bins):
    """Pad / bf16-cast the raw parameters into kernel layout (lane-dense)."""
    D = d_model
    c_pad = _round_up(n_bins, 128)

    def ln2d(ln):
        g, b = ln
        return (g.reshape(1, D).astype(jnp.float32),
                b.reshape(1, D).astype(jnp.float32))

    p = {"gene_emb": raw["gene_emb"].astype(jnp.float32),
         "val_emb": raw["val_emb"].astype(jnp.float32),
         "gene_ln": ln2d(raw["gene_ln"]),
         "val_ln": ln2d(raw["val_ln"])}

    layers = []
    for lyr in raw["layers"]:
        layers.append(dict(
            wqkv=lyr["wqkv"].astype(jnp.bfloat16),            # (D, 3D) packed
            bqkv=lyr["bqkv"].reshape(1, 3 * D).astype(jnp.float32),
            wo=lyr["wo"].astype(jnp.bfloat16),                # (D, D) no head split
            bo=lyr["bo"].reshape(1, D).astype(jnp.float32),
            ln1=ln2d(lyr["ln1"]), ln2=ln2d(lyr["ln2"]),
            w1=lyr["w1"].astype(jnp.bfloat16),
            b1=lyr["b1"].reshape(1, -1).astype(jnp.float32),
            w2=lyr["w2"].astype(jnp.bfloat16),
            b2=lyr["b2"].reshape(1, D).astype(jnp.float32)))
    p["layers"] = layers

    (dw1, db1), (dw2, db2), (dw3, db3) = raw["dec"]
    dw3p = jnp.pad(dw3, ((0, 0), (0, c_pad - n_bins)))
    db3p = jnp.pad(db3, (0, c_pad - n_bins))
    p["dec"] = dict(w1=dw1.astype(jnp.bfloat16),
                    b1=db1.reshape(1, D).astype(jnp.float32),
                    w2=dw2.astype(jnp.bfloat16),
                    b2=db2.reshape(1, D).astype(jnp.float32),
                    w3=dw3p.astype(jnp.bfloat16),
                    b3=db3p.reshape(1, c_pad).astype(jnp.float32))
    return p


# ----------------------------------------------------------------------------
# forward pass (mirrors TransformerModel.forward with defaults:
#   get_reconstruction=False, get_accuracy=False, randomize_masked_positions=False)
# ----------------------------------------------------------------------------

def transformer_forward(params, src, values, masked_values, key_padding_mask,
                        *, d_model, nhead, n_bins,
                        mask_type="src_key_padding_mask"):
    B, S = src.shape
    D = d_model
    H = nhead

    ts = _seq_tile(S)
    S_pad = _round_up(S, ts)
    pad_s = S_pad - S

    def pad_seq(a, fill=0):
        if pad_s == 0:
            return a
        return jnp.pad(a, ((0, 0), (0, pad_s)), constant_values=fill)

    src_p = pad_seq(src)
    mv_p = pad_seq(masked_values)
    labels_p = pad_seq(values)                          # labels = values.clone()
    kpm_p = pad_seq(key_padding_mask, fill=False)
    valid = (jnp.arange(S_pad) < S)[None, :]            # (1, S_pad)

    # attention key bias (True / padded keys are invisible to attention)
    if mask_type == "src_key_padding_mask":
        key_invisible = kpm_p | (~valid)
    elif mask_type == "None":
        key_invisible = jnp.broadcast_to(~valid, (B, S_pad))
    else:
        # TODO(synk): 'attn_mask' path (per-head (S,S) additive masks) not wired up.
        key_invisible = jnp.broadcast_to(~valid, (B, S_pad))
    attn_bias = jnp.where(key_invisible, -1e9, 0.0).astype(jnp.float32)
    attn_bias = attn_bias.reshape(B, 1, S_pad)

    # --- GeneEncoder / ValueEncoder (gathers in JAX glue, fused LN+add kernel)
    gene_e = params["gene_emb"][src_p]                  # (B, S_pad, D) f32
    val_e = params["val_emb"][mv_p]
    x = pallas_encode(gene_e, val_e, params["gene_ln"], params["val_ln"], ts=ts)

    # --- nlayers x fused post-norm encoder layers (single pallas_call each)
    for lyr in params["layers"]:
        x = pallas_layer(x, attn_bias, lyr, nhead=H, ts=ts)

    # --- ExprDecoder + get_masked_exp + CrossEntropyLoss, fused
    ce_mask = (kpm_p & valid).astype(jnp.float32)
    loss = pallas_decode_ce(
        x, params["dec"],
        labels_p.reshape(B, S_pad, 1).astype(jnp.int32),
        ce_mask.reshape(B, S_pad, 1),
        n_bins=n_bins, ts=ts)
    return loss[0, 0]


# ----------------------------------------------------------------------------
# main
# ----------------------------------------------------------------------------

if __name__ == "__main__":
    # small config consistent with TransformerModel.__init__
    d_model = 32
    n_token = 50
    nhead = 4
    dim_feedforward = 64
    nlayers = 2
    n_input_bins = 10
    batch, seq = 2, 8

    root = jax.random.PRNGKey(0)
    k_params, k_src, k_val, k_mask = jax.random.split(root, 4)

    raw = init_params(k_params, n_token, d_model, nhead,
                      dim_feedforward, nlayers, n_input_bins)
    params = prepare_params(raw, d_model=d_model, n_bins=n_input_bins)

    # inputs: gene token ids, binned values, key padding / masking mask
    src = jax.random.randint(k_src, (batch, seq), 1, n_token, dtype=jnp.int32)
    values = jax.random.randint(k_val, (batch, seq), 0, n_input_bins,
                                dtype=jnp.int32)
    key_padding_mask = jax.random.bernoulli(k_mask, 0.25, (batch, seq))
    key_padding_mask = key_padding_mask.at[:, 0].set(True)  # >=1 masked per cell
    # masked positions get pad_value = 0 before the value encoder
    masked_values = jnp.where(key_padding_mask, 0, values).astype(jnp.int32)

    fwd = jax.jit(functools.partial(transformer_forward,
                                    d_model=d_model, nhead=nhead,
                                    n_bins=n_input_bins,
                                    mask_type="src_key_padding_mask"))
    loss = fwd(params, src, values, masked_values, key_padding_mask)
    loss = jax.block_until_ready(loss)
    assert jnp.isfinite(loss), f"loss not finite: {loss}"
    print("KERNEL_OK")
</pallas_src>

<mosaic_0001>
module attributes {stable_mosaic.version = 11 : i64} {
  func.func @_encode_kernel(%arg0: i32, %arg1: i32, %arg2: memref<1x8x32xf32, #tpu.memory_space<vmem>>, %arg3: memref<1x8x32xf32, #tpu.memory_space<vmem>>, %arg4: memref<1x32xf32, #tpu.memory_space<vmem>>, %arg5: memref<1x32xf32, #tpu.memory_space<vmem>>, %arg6: memref<1x32xf32, #tpu.memory_space<vmem>>, %arg7: memref<1x32xf32, #tpu.memory_space<vmem>>, %arg8: memref<1x8x32xbf16, #tpu.memory_space<vmem>>) attributes {dimension_semantics = [#tpu.dimension_semantics<parallel>, #tpu.dimension_semantics<parallel>], iteration_bounds = array<i64: 2, 1>, scalar_prefetch = 0 : i64, scratch_operands = 0 : i64, tpu.core_type = #tpu.core_type<tc>, window_params = [{transform_indices = @transform_0, window_bounds = array<i64: 1, 8, 32>}, {transform_indices = @transform_1, window_bounds = array<i64: 1, 8, 32>}, {pipeline_mode = #tpu.pipeline_mode<synchronous>, transform_indices = @transform_2, window_bounds = array<i64: 1, 32>}, {pipeline_mode = #tpu.pipeline_mode<synchronous>, transform_indices = @transform_3, window_bounds = array<i64: 1, 32>}, {pipeline_mode = #tpu.pipeline_mode<synchronous>, transform_indices = @transform_4, window_bounds = array<i64: 1, 32>}, {pipeline_mode = #tpu.pipeline_mode<synchronous>, transform_indices = @transform_5, window_bounds = array<i64: 1, 32>}, {transform_indices = @transform_6, window_bounds = array<i64: 1, 8, 32>}]} {
    %c0 = arith.constant 0 : index
    %c0_0 = arith.constant 0 : index
    %c0_1 = arith.constant 0 : index
    %0 = vector.load %arg2[%c0, %c0_0, %c0_1] : memref<1x8x32xf32, #tpu.memory_space<vmem>>, vector<1x8x32xf32>
    %1 = vector.shape_cast %0 : vector<1x8x32xf32> to vector<8x32xf32>
    %c0_2 = arith.constant 0 : index
    %c0_3 = arith.constant 0 : index
    %c0_4 = arith.constant 0 : index
    %2 = vector.load %arg3[%c0_2, %c0_3, %c0_4] : memref<1x8x32xf32, #tpu.memory_space<vmem>>, vector<1x8x32xf32>
    %3 = vector.shape_cast %2 : vector<1x8x32xf32> to vector<8x32xf32>
    %c0_5 = arith.constant 0 : index
    %c0_6 = arith.constant 0 : index
    %4 = vector.load %arg4[%c0_5, %c0_6] : memref<1x32xf32, #tpu.memory_space<vmem>>, vector<1x32xf32>
    %c0_7 = arith.constant 0 : index
    %c0_8 = arith.constant 0 : index
    %5 = vector.load %arg5[%c0_7, %c0_8] : memref<1x32xf32, #tpu.memory_space<vmem>>, vector<1x32xf32>
    %cst = arith.constant dense<0.000000e+00> : vector<8xf32>
    %6 = vector.multi_reduction <add>, %1, %cst [1] : vector<8x32xf32> to vector<8xf32>
    %7 = vector.shape_cast %6 : vector<8xf32> to vector<8x1xf32>
    %cst_9 = arith.constant 3.200000e+01 : f32
    %8 = vector.broadcast %cst_9 : f32 to vector<8x1xf32>
    %9 = arith.divf %7, %8 : vector<8x1xf32>
    %10 = vector.broadcast %9 : vector<8x1xf32> to vector<8x32xf32>
    %11 = arith.subf %1, %10 : vector<8x32xf32>
    %12 = arith.mulf %11, %11 : vector<8x32xf32>
    %cst_10 = arith.constant dense<0.000000e+00> : vector<8xf32>
    %13 = vector.multi_reduction <add>, %12, %cst_10 [1] : vector<8x32xf32> to vector<8xf32>
    %14 = vector.shape_cast %13 : vector<8xf32> to vector<8x1xf32>
    %cst_11 = arith.constant 3.200000e+01 : f32
    %15 = vector.broadcast %cst_11 : f32 to vector<8x1xf32>
    %16 = arith.divf %14, %15 : vector<8x1xf32>
    %17 = vector.broadcast %9 : vector<8x1xf32> to vector<8x32xf32>
    %18 = arith.subf %1, %17 : vector<8x32xf32>
    %cst_12 = arith.constant 9.99999974E-6 : f32
    %19 = vector.broadcast %cst_12 : f32 to vector<8x1xf32>
    %20 = arith.addf %16, %19 : vector<8x1xf32>
    %21 = math.rsqrt %20 : vector<8x1xf32>
    %22 = vector.broadcast %21 : vector<8x1xf32> to vector<8x32xf32>
    %23 = arith.mulf %18, %22 : vector<8x32xf32>
    %24 = vector.broadcast %4 : vector<1x32xf32> to vector<8x32xf32>
    %25 = arith.mulf %23, %24 : vector<8x32xf32>
    %26 = vector.broadcast %5 : vector<1x32xf32> to vector<8x32xf32>
    %27 = arith.addf %25, %26 : vector<8x32xf32>
    %c0_13 = arith.constant 0 : index
    %c0_14 = arith.constant 0 : index
    %28 = vector.load %arg6[%c0_13, %c0_14] : memref<1x32xf32, #tpu.memory_space<vmem>>, vector<1x32xf32>
    %c0_15 = arith.constant 0 : index
    %c0_16 = arith.constant 0 : index
    %29 = vector.load %arg7[%c0_15, %c0_16] : memref<1x32xf32, #tpu.memory_space<vmem>>, vector<1x32xf32>
    %cst_17 = arith.constant dense<0.000000e+00> : vector<8xf32>
    %30 = vector.multi_reduction <add>, %3, %cst_17 [1] : vector<8x32xf32> to vector<8xf32>
    %31 = vector.shape_cast %30 : vector<8xf32> to vector<8x1xf32>
    %cst_18 = arith.constant 3.200000e+01 : f32
    %32 = vector.broadcast %cst_18 : f32 to vector<8x1xf32>
    %33 = arith.divf %31, %32 : vector<8x1xf32>
    %34 = vector.broadcast %33 : vector<8x1xf32> to vector<8x32xf32>
    %35 = arith.subf %3, %34 : vector<8x32xf32>
    %36 = arith.mulf %35, %35 : vector<8x32xf32>
    %cst_19 = arith.constant dense<0.000000e+00> : vector<8xf32>
    %37 = vector.multi_reduction <add>, %36, %cst_19 [1] : vector<8x32xf32> to vector<8xf32>
    %38 = vector.shape_cast %37 : vector<8xf32> to vector<8x1xf32>
    %cst_20 = arith.constant 3.200000e+01 : f32
    %39 = vector.broadcast %cst_20 : f32 to vector<8x1xf32>
    %40 = arith.divf %38, %39 : vector<8x1xf32>
    %41 = vector.broadcast %33 : vector<8x1xf32> to vector<8x32xf32>
    %42 = arith.subf %3, %41 : vector<8x32xf32>
    %cst_21 = arith.constant 9.99999974E-6 : f32
    %43 = vector.broadcast %cst_21 : f32 to vector<8x1xf32>
    %44 = arith.addf %40, %43 : vector<8x1xf32>
    %45 = math.rsqrt %44 : vector<8x1xf32>
    %46 = vector.broadcast %45 : vector<8x1xf32> to vector<8x32xf32>
    %47 = arith.mulf %42, %46 : vector<8x32xf32>
    %48 = vector.broadcast %28 : vector<1x32xf32> to vector<8x32xf32>
    %49 = arith.mulf %47, %48 : vector<8x32xf32>
    %50 = vector.broadcast %29 : vector<1x32xf32> to vector<8x32xf32>
    %51 = arith.addf %49, %50 : vector<8x32xf32>
    %52 = arith.addf %27, %51 : vector<8x32xf32>
    %53 = arith.truncf %52 : vector<8x32xf32> to vector<8x32xbf16>
    %c0_22 = arith.constant 0 : index
    %c0_23 = arith.constant 0 : index
    %c0_24 = arith.constant 0 : index
    %54 = vector.load %arg8[%c0_22, %c0_23, %c0_24] : memref<1x8x32xbf16, #tpu.memory_space<vmem>>, vector<1x8x32xbf16>
    %55 = vector.shape_cast %54 : vector<1x8x32xbf16> to vector<8x32xbf16>
    %56 = vector.shape_cast %53 : vector<8x32xbf16> to vector<1x8x32xbf16>
    tpu.vector_store %arg8[%c0_22, %c0_23, %c0_24], %56 {strides = array<i32>} : memref<1x8x32xbf16, #tpu.memory_space<vmem>>, vector<1x8x32xbf16>,
    return
  }
  func.func @transform_0(%arg0: i32, %arg1: i32) -> (i32, i32, i32) {
    %c0_i32 = arith.constant 0 : i32
    %c0_i32_0 = arith.constant 0 : i32
    return %arg0, %arg1, %c0_i32 : i32, i32, i32
  }
  func.func @transform_1(%arg0: i32, %arg1: i32) -> (i32, i32, i32) {
    %c0_i32 = arith.constant 0 : i32
    %c0_i32_0 = arith.constant 0 : i32
    return %arg0, %arg1, %c0_i32 : i32, i32, i32
  }
  func.func @transform_2(%arg0: i32, %arg1: i32) -> (i32, i32) {
    %c0_i32 = arith.constant 0 : i32
    %c0_i32_0 = arith.constant 0 : i32
    %c0_i32_1 = arith.constant 0 : i32
    return %c0_i32, %c0_i32_0 : i32, i32
  }
  func.func @transform_3(%arg0: i32, %arg1: i32) -> (i32, i32) {
    %c0_i32 = arith.constant 0 : i32
    %c0_i32_0 = arith.constant 0 : i32
    %c0_i32_1 = arith.constant 0 : i32
    return %c0_i32, %c0_i32_0 : i32, i32
  }
  func.func @transform_4(%arg0: i32, %arg1: i32) -> (i32, i32) {
    %c0_i32 = arith.constant 0 : i32
    %c0_i32_0 = arith.constant 0 : i32
    %c0_i32_1 = arith.constant 0 : i32
    return %c0_i32, %c0_i32_0 : i32, i32
  }
  func.func @transform_5(%arg0: i32, %arg1: i32) -> (i32, i32) {
    %c0_i32 = arith.constant 0 : i32
    %c0_i32_0 = arith.constant 0 : i32
    %c0_i32_1 = arith.constant 0 : i32
    return %c0_i32, %c0_i32_0 : i32, i32
  }
  func.func @transform_6(%arg0: i32, %arg1: i32) -> (i32, i32, i32) {
    %c0_i32 = arith.constant 0 : i32
    %c0_i32_0 = arith.constant 0 : i32
    return %arg0, %arg1, %c0_i32 : i32, i32, i32
  }
}

module attributes {stable_mosaic.version = 11 : i64} {
  func.func @_decode_ce_kernel(%arg0: i32, %arg1: i32, %arg2: memref<1x8x32xbf16, #tpu.memory_space<vmem>>, %arg3: memref<32x32xbf16, #tpu.memory_space<vmem>>, %arg4: memref<1x32xf32, #tpu.memory_space<vmem>>, %arg5: memref<32x32xbf16, #tpu.memory_space<vmem>>, %arg6: memref<1x32xf32, #tpu.memory_space<vmem>>, %arg7: memref<32x128xbf16, #tpu.memory_space<vmem>>, %arg8: memref<1x128xf32, #tpu.memory_space<vmem>>, %arg9: memref<1x8x1xi32, #tpu.memory_space<vmem>>, %arg10: memref<1x8x1xf32, #tpu.memory_space<vmem>>, %arg11: memref<1x1xf32, #tpu.memory_space<vmem>>, %arg12: memref<2xf32, #tpu.memory_space<smem>>) attributes {dimension_semantics = [#tpu.dimension_semantics<arbitrary>, #tpu.dimension_semantics<arbitrary>], iteration_bounds = array<i64: 2, 1>, scalar_prefetch = 0 : i64, scratch_operands = 1 : i64, tpu.core_type = #tpu.core_type<tc>, window_params = [{transform_indices = @transform_0, window_bounds = array<i64: 1, 8, 32>}, {pipeline_mode = #tpu.pipeline_mode<synchronous>, transform_indices = @transform_1, window_bounds = array<i64: 32, 32>}, {pipeline_mode = #tpu.pipeline_mode<synchronous>, transform_indices = @transform_2, window_bounds = array<i64: 1, 32>}, {pipeline_mode = #tpu.pipeline_mode<synchronous>, transform_indices = @transform_3, window_bounds = array<i64: 32, 32>}, {pipeline_mode = #tpu.pipeline_mode<synchronous>, transform_indices = @transform_4, window_bounds = array<i64: 1, 32>}, {pipeline_mode = #tpu.pipeline_mode<synchronous>, transform_indices = @transform_5, window_bounds = array<i64: 32, 128>}, {pipeline_mode = #tpu.pipeline_mode<synchronous>, transform_indices = @transform_6, window_bounds = array<i64: 1, 128>}, {transform_indices = @transform_7, window_bounds = array<i64: 1, 8, 1>}, {transform_indices = @transform_8, window_bounds = array<i64: 1, 8, 1>}, {pipeline_mode = #tpu.pipeline_mode<synchronous>, transform_indices = @transform_9, window_bounds = array<i64: 1, 1>}]} {
    %c0_i32 = arith.constant 0 : i32
    %0 = arith.cmpi eq, %arg0, %c0_i32 : i32
    %c0_i32_0 = arith.constant 0 : i32
    %1 = arith.cmpi eq, %arg1, %c0_i32_0 : i32
    %2 = arith.andi %0, %1 : i1
    %3 = arith.extui %2 : i1 to i32
    %c0_i32_1 = arith.constant 0 : i32
    %4 = arith.cmpi ne, %3, %c0_i32_1 : i32
    scf.if %4 {
      %cst_40 = arith.constant 0.000000e+00 : f32
      %c0_41 = arith.constant 0 : index
      %79 = memref.load %arg12[%c0_41] : memref<2xf32, #tpu.memory_space<smem>>
      memref.store %cst_40, %arg12[%c0_41] : memref<2xf32, #tpu.memory_space<smem>>
      %cst_42 = arith.constant 0.000000e+00 : f32
      %c1_43 = arith.constant 1 : index
      %80 = memref.load %arg12[%c1_43] : memref<2xf32, #tpu.memory_space<smem>>
      memref.store %cst_42, %arg12[%c1_43] : memref<2xf32, #tpu.memory_space<smem>>
    } else {
    }
    %c0 = arith.constant 0 : index
    %c0_2 = arith.constant 0 : index
    %c0_3 = arith.constant 0 : index
    %5 = vector.load %arg2[%c0, %c0_2, %c0_3] : memref<1x8x32xbf16, #tpu.memory_space<vmem>>, vector<1x8x32xbf16>
    %6 = vector.shape_cast %5 : vector<1x8x32xbf16> to vector<8x32xbf16>
    %c0_4 = arith.constant 0 : index
    %c0_5 = arith.constant 0 : index
    %7 = vector.load %arg3[%c0_4, %c0_5] : memref<32x32xbf16, #tpu.memory_space<vmem>>, vector<32x32xbf16>
    %cst = arith.constant dense<0.000000e+00> : vector<8x32xf32>
    %8 = tpu.matmul %6, %7, %cst {dimension_numbers = #tpu.dot_dimension_numbers<[1], [0], [0], [1], [0, 0, 1, 1], [], []>} : vector<8x32xbf16>, vector<32x32xbf16>, vector<8x32xf32> -> vector<8x32xf32>
    %c0_6 = arith.constant 0 : index
    %c0_7 = arith.constant 0 : index
    %9 = vector.load %arg4[%c0_6, %c0_7] : memref<1x32xf32, #tpu.memory_space<vmem>>, vector<1x32xf32>
    %10 = vector.broadcast %9 : vector<1x32xf32> to vector<8x32xf32>
    %11 = arith.addf %8, %10 : vector<8x32xf32>
    %cst_8 = arith.constant 0.000000e+00 : f32
    %12 = vector.broadcast %cst_8 : f32 to vector<8x32xf32>
    %13 = arith.cmpf oge, %11, %12 : vector<8x32xf32>
    %cst_9 = arith.constant 0.00999999977 : f32
    %14 = vector.broadcast %cst_9 : f32 to vector<8x32xf32>
    %15 = arith.mulf %14, %11 : vector<8x32xf32>
    %16 = arith.select %13, %11, %15 : vector<8x32xi1>, vector<8x32xf32>
    %17 = arith.truncf %16 : vector<8x32xf32> to vector<8x32xbf16>
    %c0_10 = arith.constant 0 : index
    %c0_11 = arith.constant 0 : index
    %18 = vector.load %arg5[%c0_10, %c0_11] : memref<32x32xbf16, #tpu.memory_space<vmem>>, vector<32x32xbf16>
    %cst_12 = arith.constant dense<0.000000e+00> : vector<8x32xf32>
    %19 = tpu.matmul %17, %18, %cst_12 {dimension_numbers = #tpu.dot_dimension_numbers<[1], [0], [0], [1], [0, 0, 1, 1], [], []>} : vector<8x32xbf16>, vector<32x32xbf16>, vector<8x32xf32> -> vector<8x32xf32>
    %c0_13 = arith.constant 0 : index
    %c0_14 = arith.constant 0 : index
    %20 = vector.load %arg6[%c0_13, %c0_14] : memref<1x32xf32, #tpu.memory_space<vmem>>, vector<1x32xf32>
    %21 = vector.broadcast %20 : vector<1x32xf32> to vector<8x32xf32>
    %22 = arith.addf %19, %21 : vector<8x32xf32>
    %cst_15 = arith.constant 0.000000e+00 : f32
    %23 = vector.broadcast %cst_15 : f32 to vector<8x32xf32>
    %24 = arith.cmpf oge, %22, %23 : vector<8x32xf32>
    %cst_16 = arith.constant 0.00999999977 : f32
    %25 = vector.broadcast %cst_16 : f32 to vector<8x32xf32>
    %26 = arith.mulf %25, %22 : vector<8x32xf32>
    %27 = arith.select %24, %22, %26 : vector<8x32xi1>, vector<8x32xf32>
    %28 = arith.truncf %27 : vector<8x32xf32> to vector<8x32xbf16>
    %c0_17 = arith.constant 0 : index
    %c0_18 = arith.constant 0 : index
    %29 = vector.load %arg7[%c0_17, %c0_18] : memref<32x128xbf16, #tpu.memory_space<vmem>>, vector<32x128xbf16>
    %cst_19 = arith.constant dense<0.000000e+00> : vector<8x128xf32>
    %30 = tpu.matmul %28, %29, %cst_19 {dimension_numbers = #tpu.dot_dimension_numbers<[1], [0], [0], [1], [0, 0, 1, 1], [], []>} : vector<8x32xbf16>, vector<32x128xbf16>, vector<8x128xf32> -> vector<8x128xf32>
    %c0_20 = arith.constant 0 : index
    %c0_21 = arith.constant 0 : index
    %31 = vector.load %arg8[%c0_20, %c0_21] : memref<1x128xf32, #tpu.memory_space<vmem>>, vector<1x128xf32>
    %32 = vector.broadcast %31 : vector<1x128xf32> to vector<8x128xf32>
    %33 = arith.addf %30, %32 : vector<8x128xf32>
    %34 = tpu.iota {dimensions = array<i32: 1>} : vector<8x128xi32>
    %c10_i32 = arith.constant 10 : i32
    %35 = vector.broadcast %c10_i32 : i32 to vector<8x128xi32>
    %36 = arith.cmpi slt, %34, %35 : vector<8x128xi32>
    %cst_22 = arith.constant -1.000000e+30 : f32
    %37 = vector.broadcast %cst_22 : f32 to vector<8x128xf32>
    %38 = arith.select %36, %33, %37 : vector<8x128xi1>, vector<8x128xf32>
    %c0_23 = arith.constant 0 : index
    %c0_24 = arith.constant 0 : index
    %c0_25 = arith.constant 0 : index
    %39 = vector.load %arg9[%c0_23, %c0_24, %c0_25] : memref<1x8x1xi32, #tpu.memory_space<vmem>>, vector<1x8x1xi32>
    %40 = vector.shape_cast %39 : vector<1x8x1xi32> to vector<8x1xi32>
    %c0_26 = arith.constant 0 : index
    %c0_27 = arith.constant 0 : index
    %c0_28 = arith.constant 0 : index
    %41 = vector.load %arg10[%c0_26, %c0_27, %c0_28] : memref<1x8x1xf32, #tpu.memory_space<vmem>>, vector<1x8x1xf32>
    %42 = vector.shape_cast %41 : vector<1x8x1xf32> to vector<8x1xf32>
    %cst_29 = arith.constant dense<0xFF800000> : vector<8xf32>
    %43 = vector.multi_reduction <maximumf>, %38, %cst_29 [1] : vector<8x128xf32> to vector<8xf32>
    %44 = vector.shape_cast %43 : vector<8xf32> to vector<8x1xf32>
    %45 = vector.broadcast %44 : vector<8x1xf32> to vector<8x128xf32>
    %46 = arith.subf %38, %45 : vector<8x128xf32>
    %47 = math.exp %46 : vector<8x128xf32>
    %cst_30 = arith.constant dense<0.000000e+00> : vector<8xf32>
    %48 = vector.multi_reduction <add>, %47, %cst_30 [1] : vector<8x128xf32> to vector<8xf32>
    %49 = vector.shape_cast %48 : vector<8xf32> to vector<8x1xf32>
    %50 = math.log %49 : vector<8x1xf32>
    %51 = arith.addf %50, %44 : vector<8x1xf32>
    %52 = vector.broadcast %40 : vector<8x1xi32> to vector<8x128xi32>
    %53 = arith.cmpi eq, %34, %52 : vector<8x128xi32>
    %cst_31 = arith.constant 0.000000e+00 : f32
    %54 = vector.broadcast %cst_31 : f32 to vector<8x128xf32>
    %55 = arith.select %53, %38, %54 : vector<8x128xi1>, vector<8x128xf32>
    %cst_32 = arith.constant dense<0.000000e+00> : vector<8xf32>
    %56 = vector.multi_reduction <add>, %55, %cst_32 [1] : vector<8x128xf32> to vector<8xf32>
    %57 = vector.shape_cast %56 : vector<8xf32> to vector<8x1xf32>
    %58 = arith.subf %51, %57 : vector<8x1xf32>
    %c0_33 = arith.constant 0 : index
    %59 = memref.load %arg12[%c0_33] : memref<2xf32, #tpu.memory_space<smem>>
    %60 = arith.mulf %58, %42 : vector<8x1xf32>
    %61 = vector.shape_cast %60 : vector<8x1xf32> to vector<1x8x1xf32>
    %cst_34 = arith.constant dense<0.000000e+00> : vector<1xf32>
    %62 = vector.multi_reduction <add>, %61, %cst_34 [1, 2] : vector<1x8x1xf32> to vector<1xf32>
    %63 = vector.shape_cast %62 : vector<1xf32> to vector<1x1x1xf32>
    %64 = vector.extract %63[0, 0, 0] : f32 from vector<1x1x1xf32>
    %65 = arith.addf %59, %64 : f32
    %c0_35 = arith.constant 0 : index
    %66 = memref.load %arg12[%c0_35] : memref<2xf32, #tpu.memory_space<smem>>
    memref.store %65, %arg12[%c0_35] : memref<2xf32, #tpu.memory_space<smem>>
    %c1 = arith.constant 1 : index
    %67 = memref.load %arg12[%c1] : memref<2xf32, #tpu.memory_space<smem>>
    %68 = vector.shape_cast %42 : vector<8x1xf32> to vector<1x8x1xf32>
    %cst_36 = arith.constant dense<0.000000e+00> : vector<1xf32>
    %69 = vector.multi_reduction <add>, %68, %cst_36 [1, 2] : vector<1x8x1xf32> to vector<1xf32>
    %70 = vector.shape_cast %69 : vector<1xf32> to vector<1x1x1xf32>
    %71 = vector.extract %70[0, 0, 0] : f32 from vector<1x1x1xf32>
    %72 = arith.addf %67, %71 : f32
    %c1_37 = arith.constant 1 : index
    %73 = memref.load %arg12[%c1_37] : memref<2xf32, #tpu.memory_space<smem>>
    memref.store %72, %arg12[%c1_37] : memref<2xf32, #tpu.memory_space<smem>>
    %c1_i32 = arith.constant 1 : i32
    %74 = arith.cmpi eq, %arg0, %c1_i32 : i32
    %c0_i32_38 = arith.constant 0 : i32
    %75 = arith.cmpi eq, %arg1, %c0_i32_38 : i32
    %76 = arith.andi %74, %75 : i1
    %77 = arith.extui %76 : i1 to i32
    %c0_i32_39 = arith.constant 0 : i32
    %78 = arith.cmpi ne, %77, %c0_i32_39 : i32
    scf.if %78 {
      %c0_40 = arith.constant 0 : index
      %79 = memref.load %arg12[%c0_40] : memref<2xf32, #tpu.memory_space<smem>>
      %c1_41 = arith.constant 1 : index
      %80 = memref.load %arg12[%c1_41] : memref<2xf32, #tpu.memory_space<smem>>
      %81 = arith.divf %79, %80 : f32
      %82 = vector.broadcast %81 : f32 to vector<1x1xf32>
      %c0_42 = arith.constant 0 : index
      %c0_43 = arith.constant 0 : index
      %83 = vector.load %arg11[%c0_42, %c0_43] : memref<1x1xf32, #tpu.memory_space<vmem>>, vector<1x1xf32>
      tpu.vector_store %arg11[%c0_42, %c0_43], %82 {strides = array<i32>} : memref<1x1xf32, #tpu.memory_space<vmem>>, vector<1x1xf32>,
    } else {
    }
    return
  }
  func.func @transform_0(%arg0: i32, %arg1: i32) -> (i32, i32, i32) {
    %c0_i32 = arith.constant 0 : i32
    %c0_i32_0 = arith.constant 0 : i32
    return %arg0, %arg1, %c0_i32 : i32, i32, i32
  }
  func.func @transform_1(%arg0: i32, %arg1: i32) -> (i32, i32) {
    %c0_i32 = arith.constant 0 : i32
    %c0_i32_0 = arith.constant 0 : i32
    %c0_i32_1 = arith.constant 0 : i32
    return %c0_i32, %c0_i32_0 : i32, i32
  }
  func.func @transform_2(%arg0: i32, %arg1: i32) -> (i32, i32) {
    %c0_i32 = arith.constant 0 : i32
    %c0_i32_0 = arith.constant 0 : i32
    %c0_i32_1 = arith.constant 0 : i32
    return %c0_i32, %c0_i32_0 : i32, i32
  }
  func.func @transform_3(%arg0: i32, %arg1: i32) -> (i32, i32) {
    %c0_i32 = arith.constant 0 : i32
    %c0_i32_0 = arith.constant 0 : i32
    %c0_i32_1 = arith.constant 0 : i32
    return %c0_i32, %c0_i32_0 : i32, i32
  }
  func.func @transform_4(%arg0: i32, %arg1: i32) -> (i32, i32) {
    %c0_i32 = arith.constant 0 : i32
    %c0_i32_0 = arith.constant 0 : i32
    %c0_i32_1 = arith.constant 0 : i32
    return %c0_i32, %c0_i32_0 : i32, i32
  }
  func.func @transform_5(%arg0: i32, %arg1: i32) -> (i32, i32) {
    %c0_i32 = arith.constant 0 : i32
    %c0_i32_0 = arith.constant 0 : i32
    %c0_i32_1 = arith.constant 0 : i32
    return %c0_i32, %c0_i32_0 : i32, i32
  }
  func.func @transform_6(%arg0: i32, %arg1: i32) -> (i32, i32) {
    %c0_i32 = arith.constant 0 : i32
    %c0_i32_0 = arith.constant 0 : i32
    %c0_i32_1 = arith.constant 0 : i32
    return %c0_i32, %c0_i32_0 : i32, i32
  }
  func.func @transform_7(%arg0: i32, %arg1: i32) -> (i32, i32, i32) {
    %c0_i32 = arith.constant 0 : i32
    %c0_i32_0 = arith.constant 0 : i32
    return %arg0, %arg1, %c0_i32 : i32, i32, i32
  }
  func.func @transform_8(%arg0: i32, %arg1: i32) -> (i32, i32, i32) {
    %c0_i32 = arith.constant 0 : i32
    %c0_i32_0 = arith.constant 0 : i32
    return %arg0, %arg1, %c0_i32 : i32, i32, i32
  }
  func.func @transform_9(%arg0: i32, %arg1: i32) -> (i32, i32) {
    %c0_i32 = arith.constant 0 : i32
    %c0_i32_0 = arith.constant 0 : i32
    %c0_i32_1 = arith.constant 0 : i32
    return %c0_i32, %c0_i32_0 : i32, i32
  }
}

module attributes {stable_mosaic.version = 11 : i64} {
  func.func @_layer_kernel(%arg0: i32, %arg1: i32, %arg2: memref<1x8x32xbf16, #tpu.memory_space<vmem>>, %arg3: memref<1x8x32xbf16, #tpu.memory_space<vmem>>, %arg4: memref<1x1x8xf32, #tpu.memory_space<vmem>>, %arg5: memref<32x96xbf16, #tpu.memory_space<vmem>>, %arg6: memref<1x96xf32, #tpu.memory_space<vmem>>, %arg7: memref<32x32xbf16, #tpu.memory_space<vmem>>, %arg8: memref<1x32xf32, #tpu.memory_space<vmem>>, %arg9: memref<1x32xf32, #tpu.memory_space<vmem>>, %arg10: memref<1x32xf32, #tpu.memory_space<vmem>>, %arg11: memref<32x64xbf16, #tpu.memory_space<vmem>>, %arg12: memref<1x64xf32, #tpu.memory_space<vmem>>, %arg13: memref<64x32xbf16, #tpu.memory_space<vmem>>, %arg14: memref<1x32xf32, #tpu.memory_space<vmem>>, %arg15: memref<1x32xf32, #tpu.memory_space<vmem>>, %arg16: memref<1x32xf32, #tpu.memory_space<vmem>>, %arg17: memref<1x8x32xbf16, #tpu.memory_space<vmem>>) attributes {dimension_semantics = [#tpu.dimension_semantics<parallel>, #tpu.dimension_semantics<parallel>], iteration_bounds = array<i64: 2, 1>, scalar_prefetch = 0 : i64, scratch_operands = 0 : i64, tpu.core_type = #tpu.core_type<tc>, window_params = [{transform_indices = @transform_0, window_bounds = array<i64: 1, 8, 32>}, {transform_indices = @transform_1, window_bounds = array<i64: 1, 8, 32>}, {transform_indices = @transform_2, window_bounds = array<i64: 1, 1, 8>}, {pipeline_mode = #tpu.pipeline_mode<synchronous>, transform_indices = @transform_3, window_bounds = array<i64: 32, 96>}, {pipeline_mode = #tpu.pipeline_mode<synchronous>, transform_indices = @transform_4, window_bounds = array<i64: 1, 96>}, {pipeline_mode = #tpu.pipeline_mode<synchronous>, transform_indices = @transform_5, window_bounds = array<i64: 32, 32>}, {pipeline_mode = #tpu.pipeline_mode<synchronous>, transform_indices = @transform_6, window_bounds = array<i64: 1, 32>}, {pipeline_mode = #tpu.pipeline_mode<synchronous>, transform_indices = @transform_7, window_bounds = array<i64: 1, 32>}, {pipeline_mode = #tpu.pipeline_mode<synchronous>, transform_indices = @transform_8, window_bounds = array<i64: 1, 32>}, {pipeline_mode = #tpu.pipeline_mode<synchronous>, transform_indices = @transform_9, window_bounds = array<i64: 32, 64>}, {pipeline_mode = #tpu.pipeline_mode<synchronous>, transform_indices = @transform_10, window_bounds = array<i64: 1, 64>}, {pipeline_mode = #tpu.pipeline_mode<synchronous>, transform_indices = @transform_11, window_bounds = array<i64: 64, 32>}, {pipeline_mode = #tpu.pipeline_mode<synchronous>, transform_indices = @transform_12, window_bounds = array<i64: 1, 32>}, {pipeline_mode = #tpu.pipeline_mode<synchronous>, transform_indices = @transform_13, window_bounds = array<i64: 1, 32>}, {pipeline_mode = #tpu.pipeline_mode<synchronous>, transform_indices = @transform_14, window_bounds = array<i64: 1, 32>}, {transform_indices = @transform_15, window_bounds = array<i64: 1, 8, 32>}]} {
    %c0 = arith.constant 0 : index
    %c0_0 = arith.constant 0 : index
    %c0_1 = arith.constant 0 : index
    %0 = vector.load %arg2[%c0, %c0_0, %c0_1] : memref<1x8x32xbf16, #tpu.memory_space<vmem>>, vector<1x8x32xbf16>
    %1 = vector.shape_cast %0 : vector<1x8x32xbf16> to vector<8x32xbf16>
    %c0_2 = arith.constant 0 : index
    %c0_3 = arith.constant 0 : index
    %c0_4 = arith.constant 0 : index
    %2 = vector.load %arg3[%c0_2, %c0_3, %c0_4] : memref<1x8x32xbf16, #tpu.memory_space<vmem>>, vector<1x8x32xbf16>
    %3 = vector.shape_cast %2 : vector<1x8x32xbf16> to vector<8x32xbf16>
    %c0_5 = arith.constant 0 : index
    %c0_6 = arith.constant 0 : index
    %c0_7 = arith.constant 0 : index
    %4 = vector.load %arg4[%c0_5, %c0_6, %c0_7] : memref<1x1x8xf32, #tpu.memory_space<vmem>>, vector<1x1x8xf32>
    %5 = vector.shape_cast %4 : vector<1x1x8xf32> to vector<1x8xf32>
    %c0_8 = arith.constant 0 : index
    %c0_9 = arith.constant 0 : index
    %6 = vector.load %arg5[%c0_8, %c0_9] : memref<32x96xbf16, #tpu.memory_space<vmem>>, vector<32x32xbf16>
    %cst = arith.constant dense<0.000000e+00> : vector<8x32xf32>
    %7 = tpu.matmul %3, %6, %cst {dimension_numbers = #tpu.dot_dimension_numbers<[1], [0], [0], [1], [0, 0, 1, 1], [], []>} : vector<8x32xbf16>, vector<32x32xbf16>, vector<8x32xf32> -> vector<8x32xf32>
    %c0_10 = arith.constant 0 : index
    %c0_11 = arith.constant 0 : index
    %8 = vector.load %arg6[%c0_10, %c0_11] : memref<1x96xf32, #tpu.memory_space<vmem>>, vector<1x32xf32>
    %9 = vector.broadcast %8 : vector<1x32xf32> to vector<8x32xf32>
    %10 = arith.addf %7, %9 : vector<8x32xf32>
    %c0_12 = arith.constant 0 : index
    %c32 = arith.constant 32 : index
    %11 = vector.load %arg5[%c0_12, %c32] : memref<32x96xbf16, #tpu.memory_space<vmem>>, vector<32x64xbf16>
    %cst_13 = arith.constant dense<0.000000e+00> : vector<8x64xf32>
    %12 = tpu.matmul %1, %11, %cst_13 {dimension_numbers = #tpu.dot_dimension_numbers<[1], [0], [0], [1], [0, 0, 1, 1], [], []>} : vector<8x32xbf16>, vector<32x64xbf16>, vector<8x64xf32> -> vector<8x64xf32>
    %c0_14 = arith.constant 0 : index
    %c32_15 = arith.constant 32 : index
    %13 = vector.load %arg6[%c0_14, %c32_15] : memref<1x96xf32, #tpu.memory_space<vmem>>, vector<1x64xf32>
    %14 = vector.broadcast %13 : vector<1x64xf32> to vector<8x64xf32>
    %15 = arith.addf %12, %14 : vector<8x64xf32>
    %16 = vector.extract_strided_slice %15 {offsets = [0, 0], sizes = [8, 32], strides = [1, 1]} : vector<8x64xf32> to vector<8x32xf32>
    %17 = arith.truncf %16 : vector<8x32xf32> to vector<8x32xbf16>
    %18 = vector.extract_strided_slice %15 {offsets = [0, 32], sizes = [8, 32], strides = [1, 1]} : vector<8x64xf32> to vector<8x32xf32>
    %19 = arith.truncf %18 : vector<8x32xf32> to vector<8x32xbf16>
    %20 = vector.extract_strided_slice %10 {offsets = [0, 0], sizes = [8, 8], strides = [1, 1]} : vector<8x32xf32> to vector<8x8xf32>
    %21 = arith.truncf %20 : vector<8x8xf32> to vector<8x8xbf16>
    %22 = vector.extract_strided_slice %17 {offsets = [0, 0], sizes = [8, 8], strides = [1, 1]} : vector<8x32xbf16> to vector<8x8xbf16>
    %23 = vector.extract_strided_slice %19 {offsets = [0, 0], sizes = [8, 8], strides = [1, 1]} : vector<8x32xbf16> to vector<8x8xbf16>
    "tpu.trace_start"() <{level = 10 : i32, message = "qd,kd->qk"}> : () -> ()
    %cst_16 = arith.constant dense<0.000000e+00> : vector<8x8xf32>
    %24 = tpu.matmul %21, %22, %cst_16 {dimension_numbers = #tpu.dot_dimension_numbers<[1], [1], [0], [0], [0, 0, 1, 0], [], []>} : vector<8x8xbf16>, vector<8x8xbf16>, vector<8x8xf32> -> vector<8x8xf32>
    "tpu.trace_stop"() : () -> ()
    %cst_17 = arith.constant 0.353553385 : f32
    %25 = vector.broadcast %cst_17 : f32 to vector<8x8xf32>
    %26 = arith.mulf %24, %25 : vector<8x8xf32>
    %27 = vector.broadcast %5 : vector<1x8xf32> to vector<8x8xf32>
    %28 = arith.addf %26, %27 : vector<8x8xf32>
    %cst_18 = arith.constant dense<0xFF800000> : vector<8xf32>
    %29 = vector.multi_reduction <maximumf>, %28, %cst_18 [1] : vector<8x8xf32> to vector<8xf32>
    %30 = vector.shape_cast %29 : vector<8xf32> to vector<8x1xf32>
    %31 = vector.broadcast %30 : vector<8x1xf32> to vector<8x8xf32>
    %32 = arith.subf %28, %31 : vector<8x8xf32>
    %33 = math.exp %32 : vector<8x8xf32>
    %cst_19 = arith.constant dense<0.000000e+00> : vector<8xf32>
    %34 = vector.multi_reduction <add>, %33, %cst_19 [1] : vector<8x8xf32> to vector<8xf32>
    %35 = vector.shape_cast %34 : vector<8xf32> to vector<8x1xf32>
    %36 = arith.truncf %33 : vector<8x8xf32> to vector<8x8xbf16>
    "tpu.trace_start"() <{level = 10 : i32, message = "qk,kd->qd"}> : () -> ()
    %cst_20 = arith.constant dense<0.000000e+00> : vector<8x8xf32>
    %37 = tpu.matmul %36, %23, %cst_20 {dimension_numbers = #tpu.dot_dimension_numbers<[1], [0], [0], [1], [0, 0, 1, 1], [], []>} : vector<8x8xbf16>, vector<8x8xbf16>, vector<8x8xf32> -> vector<8x8xf32>
    "tpu.trace_stop"() : () -> ()
    %38 = tpu.reciprocal %35 {approx = true} : vector<8x1xf32> -> vector<8x1xf32>
    %39 = vector.broadcast %38 : vector<8x1xf32> to vector<8x8xf32>
    %40 = arith.mulf %37, %39 : vector<8x8xf32>
    %41 = vector.extract_strided_slice %10 {offsets = [0, 8], sizes = [8, 8], strides = [1, 1]} : vector<8x32xf32> to vector<8x8xf32>
    %42 = arith.truncf %41 : vector<8x8xf32> to vector<8x8xbf16>
    %43 = vector.extract_strided_slice %17 {offsets = [0, 8], sizes = [8, 8], strides = [1, 1]} : vector<8x32xbf16> to vector<8x8xbf16>
    %44 = vector.extract_strided_slice %19 {offsets = [0, 8], sizes = [8, 8], strides = [1, 1]} : vector<8x32xbf16> to vector<8x8xbf16>
    "tpu.trace_start"() <{level = 10 : i32, message = "qd,kd->qk"}> : () -> ()
    %cst_21 = arith.constant dense<0.000000e+00> : vector<8x8xf32>
    %45 = tpu.matmul %42, %43, %cst_21 {dimension_numbers = #tpu.dot_dimension_numbers<[1], [1], [0], [0], [0, 0, 1, 0], [], []>} : vector<8x8xbf16>, vector<8x8xbf16>, vector<8x8xf32> -> vector<8x8xf32>
    "tpu.trace_stop"() : () -> ()
    %cst_22 = arith.constant 0.353553385 : f32
    %46 = vector.broadcast %cst_22 : f32 to vector<8x8xf32>
    %47 = arith.mulf %45, %46 : vector<8x8xf32>
    %48 = vector.broadcast %5 : vector<1x8xf32> to vector<8x8xf32>
    %49 = arith.addf %47, %48 : vector<8x8xf32>
    %cst_23 = arith.constant dense<0xFF800000> : vector<8xf32>
    %50 = vector.multi_reduction <maximumf>, %49, %cst_23 [1] : vector<8x8xf32> to vector<8xf32>
    %51 = vector.shape_cast %50 : vector<8xf32> to vector<8x1xf32>
    %52 = vector.broadcast %51 : vector<8x1xf32> to vector<8x8xf32>
    %53 = arith.subf %49, %52 : vector<8x8xf32>
    %54 = math.exp %53 : vector<8x8xf32>
    %cst_24 = arith.constant dense<0.000000e+00> : vector<8xf32>
    %55 = vector.multi_reduction <add>, %54, %cst_24 [1] : vector<8x8xf32> to vector<8xf32>
    %56 = vector.shape_cast %55 : vector<8xf32> to vector<8x1xf32>
    %57 = arith.truncf %54 : vector<8x8xf32> to vector<8x8xbf16>
    "tpu.trace_start"() <{level = 10 : i32, message = "qk,kd->qd"}> : () -> ()
    %cst_25 = arith.constant dense<0.000000e+00> : vector<8x8xf32>
    %58 = tpu.matmul %57, %44, %cst_25 {dimension_numbers = #tpu.dot_dimension_numbers<[1], [0], [0], [1], [0, 0, 1, 1], [], []>} : vector<8x8xbf16>, vector<8x8xbf16>, vector<8x8xf32> -> vector<8x8xf32>
    "tpu.trace_stop"() : () -> ()
    %59 = tpu.reciprocal %56 {approx = true} : vector<8x1xf32> -> vector<8x1xf32>
    %60 = vector.broadcast %59 : vector<8x1xf32> to vector<8x8xf32>
    %61 = arith.mulf %58, %60 : vector<8x8xf32>
    %62 = vector.extract_strided_slice %10 {offsets = [0, 16], sizes = [8, 8], strides = [1, 1]} : vector<8x32xf32> to vector<8x8xf32>
    %63 = arith.truncf %62 : vector<8x8xf32> to vector<8x8xbf16>
    %64 = vector.extract_strided_slice %17 {offsets = [0, 16], sizes = [8, 8], strides = [1, 1]} : vector<8x32xbf16> to vector<8x8xbf16>
    %65 = vector.extract_strided_slice %19 {offsets = [0, 16], sizes = [8, 8], strides = [1, 1]} : vector<8x32xbf16> to vector<8x8xbf16>
    "tpu.trace_start"() <{level = 10 : i32, message = "qd,kd->qk"}> : () -> ()
    %cst_26 = arith.constant dense<0.000000e+00> : vector<8x8xf32>
    %66 = tpu.matmul %63, %64, %cst_26 {dimension_numbers = #tpu.dot_dimension_numbers<[1], [1], [0], [0], [0, 0, 1, 0], [], []>} : vector<8x8xbf16>, vector<8x8xbf16>, vector<8x8xf32> -> vector<8x8xf32>
    "tpu.trace_stop"() : () -> ()
    %cst_27 = arith.constant 0.353553385 : f32
    %67 = vector.broadcast %cst_27 : f32 to vector<8x8xf32>
    %68 = arith.mulf %66, %67 : vector<8x8xf32>
    %69 = vector.broadcast %5 : vector<1x8xf32> to vector<8x8xf32>
    %70 = arith.addf %68, %69 : vector<8x8xf32>
    %cst_28 = arith.constant dense<0xFF800000> : vector<8xf32>
    %71 = vector.multi_reduction <maximumf>, %70, %cst_28 [1] : vector<8x8xf32> to vector<8xf32>
    %72 = vector.shape_cast %71 : vector<8xf32> to vector<8x1xf32>
    %73 = vector.broadcast %72 : vector<8x1xf32> to vector<8x8xf32>
    %74 = arith.subf %70, %73 : vector<8x8xf32>
    %75 = math.exp %74 : vector<8x8xf32>
    %cst_29 = arith.constant dense<0.000000e+00> : vector<8xf32>
    %76 = vector.multi_reduction <add>, %75, %cst_29 [1] : vector<8x8xf32> to vector<8xf32>
    %77 = vector.shape_cast %76 : vector<8xf32> to vector<8x1xf32>
    %78 = arith.truncf %75 : vector<8x8xf32> to vector<8x8xbf16>
    "tpu.trace_start"() <{level = 10 : i32, message = "qk,kd->qd"}> : () -> ()
    %cst_30 = arith.constant dense<0.000000e+00> : vector<8x8xf32>
    %79 = tpu.matmul %78, %65, %cst_30 {dimension_numbers = #tpu.dot_dimension_numbers<[1], [0], [0], [1], [0, 0, 1, 1], [], []>} : vector<8x8xbf16>, vector<8x8xbf16>, vector<8x8xf32> -> vector<8x8xf32>
    "tpu.trace_stop"() : () -> ()
    %80 = tpu.reciprocal %77 {approx = true} : vector<8x1xf32> -> vector<8x1xf32>
    %81 = vector.broadcast %80 : vector<8x1xf32> to vector<8x8xf32>
    %82 = arith.mulf %79, %81 : vector<8x8xf32>
    %83 = vector.extract_strided_slice %10 {offsets = [0, 24], sizes = [8, 8], strides = [1, 1]} : vector<8x32xf32> to vector<8x8xf32>
    %84 = arith.truncf %83 : vector<8x8xf32> to vector<8x8xbf16>
    %85 = vector.extract_strided_slice %17 {offsets = [0, 24], sizes = [8, 8], strides = [1, 1]} : vector<8x32xbf16> to vector<8x8xbf16>
    %86 = vector.extract_strided_slice %19 {offsets = [0, 24], sizes = [8, 8], strides = [1, 1]} : vector<8x32xbf16> to vector<8x8xbf16>
    "tpu.trace_start"() <{level = 10 : i32, message = "qd,kd->qk"}> : () -> ()
    %cst_31 = arith.constant dense<0.000000e+00> : vector<8x8xf32>
    %87 = tpu.matmul %84, %85, %cst_31 {dimension_numbers = #tpu.dot_dimension_numbers<[1], [1], [0], [0], [0, 0, 1, 0], [], []>} : vector<8x8xbf16>, vector<8x8xbf16>, vector<8x8xf32> -> vector<8x8xf32>
    "tpu.trace_stop"() : () -> ()
    %cst_32 = arith.constant 0.353553385 : f32
    %88 = vector.broadcast %cst_32 : f32 to vector<8x8xf32>
    %89 = arith.mulf %87, %88 : vector<8x8xf32>
    %90 = vector.broadcast %5 : vector<1x8xf32> to vector<8x8xf32>
    %91 = arith.addf %89, %90 : vector<8x8xf32>
    %cst_33 = arith.constant dense<0xFF800000> : vector<8xf32>
    %92 = vector.multi_reduction <maximumf>, %91, %cst_33 [1] : vector<8x8xf32> to vector<8xf32>
    %93 = vector.shape_cast %92 : vector<8xf32> to vector<8x1xf32>
    %94 = vector.broadcast %93 : vector<8x1xf32> to vector<8x8xf32>
    %95 = arith.subf %91, %94 : vector<8x8xf32>
    %96 = math.exp %95 : vector<8x8xf32>
    %cst_34 = arith.constant dense<0.000000e+00> : vector<8xf32>
    %97 = vector.multi_reduction <add>, %96, %cst_34 [1] : vector<8x8xf32> to vector<8xf32>
    %98 = vector.shape_cast %97 : vector<8xf32> to vector<8x1xf32>
    %99 = arith.truncf %96 : vector<8x8xf32> to vector<8x8xbf16>
    "tpu.trace_start"() <{level = 10 : i32, message = "qk,kd->qd"}> : () -> ()
    %cst_35 = arith.constant dense<0.000000e+00> : vector<8x8xf32>
    %100 = tpu.matmul %99, %86, %cst_35 {dimension_numbers = #tpu.dot_dimension_numbers<[1], [0], [0], [1], [0, 0, 1, 1], [], []>} : vector<8x8xbf16>, vector<8x8xbf16>, vector<8x8xf32> -> vector<8x8xf32>
    "tpu.trace_stop"() : () -> ()
    %101 = tpu.reciprocal %98 {approx = true} : vector<8x1xf32> -> vector<8x1xf32>
    %102 = vector.broadcast %101 : vector<8x1xf32> to vector<8x8xf32>
    %103 = arith.mulf %100, %102 : vector<8x8xf32>
    %104 = tpu.concatenate %40, %61, %82, %103 in 1 : vector<8x8xf32>, vector<8x8xf32>, vector<8x8xf32>, vector<8x8xf32> -> vector<8x32xf32>
    %105 = arith.truncf %104 : vector<8x32xf32> to vector<8x32xbf16>
    %c0_36 = arith.constant 0 : index
    %c0_37 = arith.constant 0 : index
    %106 = vector.load %arg7[%c0_36, %c0_37] : memref<32x32xbf16, #tpu.memory_space<vmem>>, vector<32x32xbf16>
    %cst_38 = arith.constant dense<0.000000e+00> : vector<8x32xf32>
    %107 = tpu.matmul %105, %106, %cst_38 {dimension_numbers = #tpu.dot_dimension_numbers<[1], [0], [0], [1], [0, 0, 1, 1], [], []>} : vector<8x32xbf16>, vector<32x32xbf16>, vector<8x32xf32> -> vector<8x32xf32>
    %c0_39 = arith.constant 0 : index
    %c0_40 = arith.constant 0 : index
    %108 = vector.load %arg8[%c0_39, %c0_40] : memref<1x32xf32, #tpu.memory_space<vmem>>, vector<1x32xf32>
    %109 = vector.broadcast %108 : vector<1x32xf32> to vector<8x32xf32>
    %110 = arith.addf %107, %109 : vector<8x32xf32>
    %111 = arith.extf %3 : vector<8x32xbf16> to vector<8x32xf32>
    %112 = arith.addf %111, %110 : vector<8x32xf32>
    %c0_41 = arith.constant 0 : index
    %c0_42 = arith.constant 0 : index
    %113 = vector.load %arg9[%c0_41, %c0_42] : memref<1x32xf32, #tpu.memory_space<vmem>>, vector<1x32xf32>
    %c0_43 = arith.constant 0 : index
    %c0_44 = arith.constant 0 : index
    %114 = vector.load %arg10[%c0_43, %c0_44] : memref<1x32xf32, #tpu.memory_space<vmem>>, vector<1x32xf32>
    %cst_45 = arith.constant dense<0.000000e+00> : vector<8xf32>
    %115 = vector.multi_reduction <add>, %112, %cst_45 [1] : vector<8x32xf32> to vector<8xf32>
    %116 = vector.shape_cast %115 : vector<8xf32> to vector<8x1xf32>
    %cst_46 = arith.constant 3.200000e+01 : f32
    %117 = vector.broadcast %cst_46 : f32 to vector<8x1xf32>
    %118 = arith.divf %116, %117 : vector<8x1xf32>
    %119 = vector.broadcast %118 : vector<8x1xf32> to vector<8x32xf32>
    %120 = arith.subf %112, %119 : vector<8x32xf32>
    %121 = arith.mulf %120, %120 : vector<8x32xf32>
    %cst_47 = arith.constant dense<0.000000e+00> : vector<8xf32>
    %122 = vector.multi_reduction <add>, %121, %cst_47 [1] : vector<8x32xf32> to vector<8xf32>
    %123 = vector.shape_cast %122 : vector<8xf32> to vector<8x1xf32>
    %cst_48 = arith.constant 3.200000e+01 : f32
    %124 = vector.broadcast %cst_48 : f32 to vector<8x1xf32>
    %125 = arith.divf %123, %124 : vector<8x1xf32>
    %126 = vector.broadcast %118 : vector<8x1xf32> to vector<8x32xf32>
    %127 = arith.subf %112, %126 : vector<8x32xf32>
    %cst_49 = arith.constant 9.99999974E-6 : f32
    %128 = vector.broadcast %cst_49 : f32 to vector<8x1xf32>
    %129 = arith.addf %125, %128 : vector<8x1xf32>
    %130 = math.rsqrt %129 : vector<8x1xf32>
    %131 = vector.broadcast %130 : vector<8x1xf32> to vector<8x32xf32>
    %132 = arith.mulf %127, %131 : vector<8x32xf32>
    %133 = vector.broadcast %113 : vector<1x32xf32> to vector<8x32xf32>
    %134 = arith.mulf %132, %133 : vector<8x32xf32>
    %135 = vector.broadcast %114 : vector<1x32xf32> to vector<8x32xf32>
    %136 = arith.addf %134, %135 : vector<8x32xf32>
    %137 = arith.truncf %136 : vector<8x32xf32> to vector<8x32xbf16>
    %c0_50 = arith.constant 0 : index
    %c0_51 = arith.constant 0 : index
    %138 = vector.load %arg11[%c0_50, %c0_51] : memref<32x64xbf16, #tpu.memory_space<vmem>>, vector<32x64xbf16>
    %cst_52 = arith.constant dense<0.000000e+00> : vector<8x64xf32>
    %139 = tpu.matmul %137, %138, %cst_52 {dimension_numbers = #tpu.dot_dimension_numbers<[1], [0], [0], [1], [0, 0, 1, 1], [], []>} : vector<8x32xbf16>, vector<32x64xbf16>, vector<8x64xf32> -> vector<8x64xf32>
    %c0_53 = arith.constant 0 : index
    %c0_54 = arith.constant 0 : index
    %140 = vector.load %arg12[%c0_53, %c0_54] : memref<1x64xf32, #tpu.memory_space<vmem>>, vector<1x64xf32>
    %141 = vector.broadcast %140 : vector<1x64xf32> to vector<8x64xf32>
    %142 = arith.addf %139, %141 : vector<8x64xf32>
    %cst_55 = arith.constant 0.000000e+00 : f32
    %143 = vector.broadcast %cst_55 : f32 to vector<8x64xf32>
    %144 = arith.maximumf %142, %143 : vector<8x64xf32>
    %145 = arith.truncf %144 : vector<8x64xf32> to vector<8x64xbf16>
    %c0_56 = arith.constant 0 : index
    %c0_57 = arith.constant 0 : index
    %146 = vector.load %arg13[%c0_56, %c0_57] : memref<64x32xbf16, #tpu.memory_space<vmem>>, vector<64x32xbf16>
    %cst_58 = arith.constant dense<0.000000e+00> : vector<8x32xf32>
    %147 = tpu.matmul %145, %146, %cst_58 {dimension_numbers = #tpu.dot_dimension_numbers<[1], [0], [0], [1], [0, 0, 1, 1], [], []>} : vector<8x64xbf16>, vector<64x32xbf16>, vector<8x32xf32> -> vector<8x32xf32>
    %c0_59 = arith.constant 0 : index
    %c0_60 = arith.constant 0 : index
    %148 = vector.load %arg14[%c0_59, %c0_60] : memref<1x32xf32, #tpu.memory_space<vmem>>, vector<1x32xf32>
    %149 = vector.broadcast %148 : vector<1x32xf32> to vector<8x32xf32>
    %150 = arith.addf %147, %149 : vector<8x32xf32>
    %151 = arith.addf %136, %150 : vector<8x32xf32>
    %c0_61 = arith.constant 0 : index
    %c0_62 = arith.constant 0 : index
    %152 = vector.load %arg15[%c0_61, %c0_62] : memref<1x32xf32, #tpu.memory_space<vmem>>, vector<1x32xf32>
    %c0_63 = arith.constant 0 : index
    %c0_64 = arith.constant 0 : index
    %153 = vector.load %arg16[%c0_63, %c0_64] : memref<1x32xf32, #tpu.memory_space<vmem>>, vector<1x32xf32>
    %cst_65 = arith.constant dense<0.000000e+00> : vector<8xf32>
    %154 = vector.multi_reduction <add>, %151, %cst_65 [1] : vector<8x32xf32> to vector<8xf32>
    %155 = vector.shape_cast %154 : vector<8xf32> to vector<8x1xf32>
    %cst_66 = arith.constant 3.200000e+01 : f32
    %156 = vector.broadcast %cst_66 : f32 to vector<8x1xf32>
    %157 = arith.divf %155, %156 : vector<8x1xf32>
    %158 = vector.broadcast %157 : vector<8x1xf32> to vector<8x32xf32>
    %159 = arith.subf %151, %158 : vector<8x32xf32>
    %160 = arith.mulf %159, %159 : vector<8x32xf32>
    %cst_67 = arith.constant dense<0.000000e+00> : vector<8xf32>
    %161 = vector.multi_reduction <add>, %160, %cst_67 [1] : vector<8x32xf32> to vector<8xf32>
    %162 = vector.shape_cast %161 : vector<8xf32> to vector<8x1xf32>
    %cst_68 = arith.constant 3.200000e+01 : f32
    %163 = vector.broadcast %cst_68 : f32 to vector<8x1xf32>
    %164 = arith.divf %162, %163 : vector<8x1xf32>
    %165 = vector.broadcast %157 : vector<8x1xf32> to vector<8x32xf32>
    %166 = arith.subf %151, %165 : vector<8x32xf32>
    %cst_69 = arith.constant 9.99999974E-6 : f32
    %167 = vector.broadcast %cst_69 : f32 to vector<8x1xf32>
    %168 = arith.addf %164, %167 : vector<8x1xf32>
    %169 = math.rsqrt %168 : vector<8x1xf32>
    %170 = vector.broadcast %169 : vector<8x1xf32> to vector<8x32xf32>
    %171 = arith.mulf %166, %170 : vector<8x32xf32>
    %172 = vector.broadcast %152 : vector<1x32xf32> to vector<8x32xf32>
    %173 = arith.mulf %171, %172 : vector<8x32xf32>
    %174 = vector.broadcast %153 : vector<1x32xf32> to vector<8x32xf32>
    %175 = arith.addf %173, %174 : vector<8x32xf32>
    %176 = arith.truncf %175 : vector<8x32xf32> to vector<8x32xbf16>
    %c0_70 = arith.constant 0 : index
    %c0_71 = arith.constant 0 : index
    %c0_72 = arith.constant 0 : index
    %177 = vector.load %arg17[%c0_70, %c0_71, %c0_72] : memref<1x8x32xbf16, #tpu.memory_space<vmem>>, vector<1x8x32xbf16>
    %178 = vector.shape_cast %177 : vector<1x8x32xbf16> to vector<8x32xbf16>
    %179 = vector.shape_cast %176 : vector<8x32xbf16> to vector<1x8x32xbf16>
    tpu.vector_store %arg17[%c0_70, %c0_71, %c0_72], %179 {strides = array<i32>} : memref<1x8x32xbf16, #tpu.memory_space<vmem>>, vector<1x8x32xbf16>,
    return
  }
  func.func @transform_0(%arg0: i32, %arg1: i32) -> (i32, i32, i32) {
    %c0_i32 = arith.constant 0 : i32
    %c0_i32_0 = arith.constant 0 : i32
    %c0_i32_1 = arith.constant 0 : i32
    return %arg0, %c0_i32, %c0_i32_0 : i32, i32, i32
  }
  func.func @transform_1(%arg0: i32, %arg1: i32) -> (i32, i32, i32) {
    %c0_i32 = arith.constant 0 : i32
    %c0_i32_0 = arith.constant 0 : i32
    return %arg0, %arg1, %c0_i32 : i32, i32, i32
  }
  func.func @transform_2(%arg0: i32, %arg1: i32) -> (i32, i32, i32) {
    %c0_i32 = arith.constant 0 : i32
    %c0_i32_0 = arith.constant 0 : i32
    %c0_i32_1 = arith.constant 0 : i32
    return %arg0, %c0_i32, %c0_i32_0 : i32, i32, i32
  }
  func.func @transform_3(%arg0: i32, %arg1: i32) -> (i32, i32) {
    %c0_i32 = arith.constant 0 : i32
    %c0_i32_0 = arith.constant 0 : i32
    %c0_i32_1 = arith.constant 0 : i32
    return %c0_i32, %c0_i32_0 : i32, i32
  }
  func.func @transform_4(%arg0: i32, %arg1: i32) -> (i32, i32) {
    %c0_i32 = arith.constant 0 : i32
    %c0_i32_0 = arith.constant 0 : i32
    %c0_i32_1 = arith.constant 0 : i32
    return %c0_i32, %c0_i32_0 : i32, i32
  }
  func.func @transform_5(%arg0: i32, %arg1: i32) -> (i32, i32) {
    %c0_i32 = arith.constant 0 : i32
    %c0_i32_0 = arith.constant 0 : i32
    %c0_i32_1 = arith.constant 0 : i32
    return %c0_i32, %c0_i32_0 : i32, i32
  }
  func.func @transform_6(%arg0: i32, %arg1: i32) -> (i32, i32) {
    %c0_i32 = arith.constant 0 : i32
    %c0_i32_0 = arith.constant 0 : i32
    %c0_i32_1 = arith.constant 0 : i32
    return %c0_i32, %c0_i32_0 : i32, i32
  }
  func.func @transform_7(%arg0: i32, %arg1: i32) -> (i32, i32) {
    %c0_i32 = arith.constant 0 : i32
    %c0_i32_0 = arith.constant 0 : i32
    %c0_i32_1 = arith.constant 0 : i32
    return %c0_i32, %c0_i32_0 : i32, i32
  }
  func.func @transform_8(%arg0: i32, %arg1: i32) -> (i32, i32) {
    %c0_i32 = arith.constant 0 : i32
    %c0_i32_0 = arith.constant 0 : i32
    %c0_i32_1 = arith.constant 0 : i32
    return %c0_i32, %c0_i32_0 : i32, i32
  }
  func.func @transform_9(%arg0: i32, %arg1: i32) -> (i32, i32) {
    %c0_i32 = arith.constant 0 : i32
    %c0_i32_0 = arith.constant 0 : i32
    %c0_i32_1 = arith.constant 0 : i32
    return %c0_i32, %c0_i32_0 : i32, i32
  }
  func.func @transform_10(%arg0: i32, %arg1: i32) -> (i32, i32) {
    %c0_i32 = arith.constant 0 : i32
    %c0_i32_0 = arith.constant 0 : i32
    %c0_i32_1 = arith.constant 0 : i32
    return %c0_i32, %c0_i32_0 : i32, i32
  }
  func.func @transform_11(%arg0: i32, %arg1: i32) -> (i32, i32) {
    %c0_i32 = arith.constant 0 : i32
    %c0_i32_0 = arith.constant 0 : i32
    %c0_i32_1 = arith.constant 0 : i32
    return %c0_i32, %c0_i32_0 : i32, i32
  }
  func.func @transform_12(%arg0: i32, %arg1: i32) -> (i32, i32) {
    %c0_i32 = arith.constant 0 : i32
    %c0_i32_0 = arith.constant 0 : i32
    %c0_i32_1 = arith.constant 0 : i32
    return %c0_i32, %c0_i32_0 : i32, i32
  }
  func.func @transform_13(%arg0: i32, %arg1: i32) -> (i32, i32) {
    %c0_i32 = arith.constant 0 : i32
    %c0_i32_0 = arith.constant 0 : i32
    %c0_i32_1 = arith.constant 0 : i32
    return %c0_i32, %c0_i32_0 : i32, i32
  }
  func.func @transform_14(%arg0: i32, %arg1: i32) -> (i32, i32) {
    %c0_i32 = arith.constant 0 : i32
    %c0_i32_0 = arith.constant 0 : i32
    %c0_i32_1 = arith.constant 0 : i32
    return %c0_i32, %c0_i32_0 : i32, i32
  }
  func.func @transform_15(%arg0: i32, %arg1: i32) -> (i32, i32, i32) {
    %c0_i32 = arith.constant 0 : i32
    %c0_i32_0 = arith.constant 0 : i32
    return %arg0, %arg1, %c0_i32 : i32, i32, i32
  }
}

</mosaic_0001>

<bundles_post_ra>
// kernel: transformer_forward.4
= control target key start
LH: loop header
LB: loop body
LE: loop exit
PB: predicated region body
PF: predicated region fallthrough
CT: control target
= control target key end

     0   :  { %s562_s21 = smov 0   ;;  %s564_s22 = smov 0   ;;  %s618_s0 = inlined_call_operand.vmem [shape: f32[2,8,32], index: 0, kind: input, shape index: {}]   ;;  %s619_s1 = inlined_call_operand.vmem [shape: f32[2,8,32], index: 1, kind: input, shape index: {}]   ;;  %s620_s2 = inlined_call_operand.vmem [shape: f32[1,32], index: 2, kind: input, shape index: {}]   ;;  %s621_s3 = inlined_call_operand.vmem [shape: f32[1,32], index: 3, kind: input, shape index: {}]   ;;  %s622_s4 = inlined_call_operand.vmem [shape: f32[1,32], index: 4, kind: input, shape index: {}]   ;;  %s623_s5 = inlined_call_operand.vmem [shape: f32[1,32], index: 5, kind: input, shape index: {}]   ;;  %s624_s6 = inlined_call_operand.vmem [shape: bf16[2,8,32], index: 6, kind: output, shape index: {}]  }
   0x1   :  { %s566_s23 = smov 0  }
   0x2 LB: > { %s28_s24 = sadd.s32 1, %s521_s22  ;;  %p465_p0 = scmp.ge.s32.totalorder %s525_s23, 1  ;;  %s525_s23 = sphi %s566_s23, %s16_s23   ;;  %s521_s22 = sphi %s564_s22, %s626_s22   ;;  %s517_s21 = sphi %s562_s21, %s625_s21  }
   0x3   : > { %p30_p1 = scmp.ge.s32.totalorder %s28_s24, 2  ;;  %p244_p2 = scmp.lt.s32.totalorder %s525_s23, 3 }
   0x5   : > { %s628_s24 = smov (%p30_p1, %s28_s24), 0  ;;  %p245_p3 = pnand %p465_p0, %p244_p2 }
   0x6   : > { %p285_p4 = scmp.lt.s32.totalorder (!%p245_p3), %s517_s21, 1 }
   0x7   : > { %248 = sbr.rel (%p245_p3) target bundleno = 333 (0x14d), region = 44 }
   0xc   : > { %s630_s21 = smov (!%p285_p4, %s517_s21), 1  ;;  %vm310_vm0 = vcmask 261120   ;;  %v469_v22 = vld [vmem:[%s620_s2] ss:$0 sm:$0xff]  ;;  %vm370_vm1 = vcmask 257024  }
   0xd   : > { %s466_s25 = sshll.u32 %s630_s21, 3  ;;  %v471_v24 = vld [vmem:[%s622_s4] ss:$0 sm:$0xff]  ;;  %s468_s16 = sshll.u32 %s630_s21, 2 }
   0xe   : > { %s291_s28 = scalar_lea.vmem %s618_s0, %s466_s25  ;;  %s298_s7 = scalar_lea.vmem %s619_s1, %s466_s25  ;;  %v470_v27 = vld [vmem:[%s621_s3] ss:$0 sm:$0xff] }
   0xf   : > { %v306_v0 = vld [vmem:[%s291_s28] sm:$0xff]  ;;  %s305_s19 = scalar_lea.vmem %s624_s6, %s468_s16 }
  0x10   : > { %v311_v1 = vsel %vm310_vm0, %v306_v0, 0.0  ;;  %v307_v2 = vld [vmem:[%s298_s7] sm:$0xff] }
  0x11   : > { %312 = vadd.xlane.f32.xlu0 %v311_v1  ;;  %v341_v3 = vsel %vm310_vm0, %v307_v2, 0.0  ;;  %v472_v28 = vld [vmem:[%s623_s5] ss:$0 sm:$0xff] }
  0x15   : > { %342 = vadd.xlane.f32.xlu0 %v341_v3 }
  0x9a   : > { %v313_v4 = vpop.xlane.xlu0 %312 }
  0x9b   : > { %v315_v5 = vmul.f32 0.03125, %v313_v4 }
  0x9d   : > { %v316_v6 = vsub.f32 %v306_v0, %v315_v5 }
  0x9e   : > { %v343_v7 = vpop.xlane.xlu0 %342 }
  0x9f   : > { %v344_v8 = vmul.f32 0.03125, %v343_v7  ;;  %v317_v9 = vmul.f32 %v316_v6, %v316_v6 }
  0xa1   : > { %v345_v10 = vsub.f32 %v307_v2, %v344_v8  ;;  %v318_v11 = vsel %vm310_vm0, %v317_v9, 0.0 }
  0xa2   : > { %319 = vadd.xlane.f32.xlu1 %v318_v11 }
  0xa3   : > { %v346_v12 = vmul.f32 %v345_v10, %v345_v10 }
  0xa5   : > { %v347_v13 = vsel %vm310_vm0, %v346_v12, 0.0 }
  0xa6   : > { %348 = vadd.xlane.f32.xlu1 %v347_v13 }
 0x12b   : > { %v320_v14 = vpop.xlane.xlu1 %319 }
 0x12c   : > { %v321_v15 = vmul.f32 0.03125, %v320_v14 }
 0x12e   : > { %v322_v16 = vadd.f32 1e-05, %v321_v15 }
 0x12f   : > { %v349_v17 = vpop.xlane.xlu1 %348 }
 0x130   : > { %499 = vrsqrt.f32 %v322_v16  ;;  %v350_v18 = vmul.f32 0.03125, %v349_v17 }
 0x132   : > { %v351_v19 = vadd.f32 1e-05, %v350_v18 }
 0x134   : > { %501 = vrsqrt.f32 %v351_v19 }
 0x13d   : > { %v500_v20 = vpop.eup %499 }
 0x13e   : > { %v324_v21 = vmul.f32 %v500_v20, %v316_v6 }
 0x140   : > { %v331_v25 = vmul.f32 %v469_v22, %v324_v21 }
 0x141   : > { %v502_v23 = vpop.eup %501 }
 0x142   : > { %v353_v26 = vmul.f32 %v502_v23, %v345_v10  ;;  %v338_v30 = vadd.f32 %v470_v27, %v331_v25 }
 0x144   : > { %v360_v29 = vmul.f32 %v471_v24, %v353_v26 }
 0x146   : > { %v367_v31 = vadd.f32 %v472_v28, %v360_v29 }
 0x148   : > { %v368_v32 = vadd.f32 %v367_v31, %v338_v30 }
 0x14a   : > { %v369_v33 = vpack.c.bf16 %v368_v32, %v368_v32 }
 0x14c   : > { %371 = vst.msk [vmem:[%s305_s19] sm:$0xf] %vm370_vm1, %v369_v33 }
 0x14d PF: > { %s16_s23 = sadd.s32 1, %s525_s23   ;;  %s625_s21 = smov %s521_s22 }
 0x14e   : > { %p13_p5 = scmp.ge.s32.totalorder %s16_s23, 4   ;;  %s626_s22 = smov %s628_s24 }
 0x150   :  { %15 = sbr.rel (!%p13_p5) target bundleno = 2 (0x2), region = 77 }

// kernel: transformer_forward.7
= control target key start
LH: loop header
LB: loop body
LE: loop exit
PB: predicated region body
PF: predicated region fallthrough
CT: control target
= control target key end

     0   :  { %14 = vsyncpa [#allocation4], 0  ;;  %s995_s30 = smov 0   ;;  %s997_s10 = smov 0   ;;  %s1091_s0 = inlined_call_operand.vmem [shape: bf16[2,8,32], index: 0, kind: input, shape index: {}]   ;;  %s1092_s1 = inlined_call_operand.vmem [shape: bf16[32,32], index: 1, kind: input, shape index: {}]   ;;  %s1093_s2 = inlined_call_operand.vmem [shape: f32[1,32], index: 2, kind: input, shape index: {}]   ;;  %s1094_s3 = inlined_call_operand.vmem [shape: bf16[32,32], index: 3, kind: input, shape index: {}]   ;;  %s1095_s4 = inlined_call_operand.vmem [shape: f32[1,32], index: 4, kind: input, shape index: {}]   ;;  %s1096_s5 = inlined_call_operand.vmem [shape: bf16[32,128], index: 5, kind: input, shape index: {}]   ;;  %s1097_s6 = inlined_call_operand.vmem [shape: f32[1,128], index: 6, kind: input, shape index: {}]   ;;  %s1098_s7 = inlined_call_operand.vmem [shape: s32[2,8,1], index: 7, kind: input, shape index: {}]   ;;  %s1099_s8 = inlined_call_operand.vmem [shape: f32[2,8,1], index: 8, kind: input, shape index: {}]   ;;  %s1100_s9 = inlined_call_operand.hbm [shape: f32[1,1], index: 9, kind: output, shape index: {}]  }
   0x1   :  { %s999_s11 = smov 0  }
   0x2 LB: > { %s770_s12 = sadd.s32 4294967295, %s938_s11   ;;  %s32_s13 = sadd.s32 1, %s934_s10  ;;  %s938_s11 = sphi %s999_s11, %s20_s11   ;;  %s934_s10 = sphi %s997_s10, %s1103_s10   ;;  %s930_s30 = sphi %s995_s30, %s1102_s30  }
   0x3   : > { %p34_p0 = scmp.ge.s32.totalorder %s32_s13, 2  ;;  %p773_p1 = scmp.ge.s32.totalorder %s938_s11, 1 }
   0x4   : > { %p327_p2 = scmp.lt.s32.totalorder %s938_s11, 3 }
   0x5   : > { %s1105_s13 = smov (%p34_p0, %s32_s13), 0 }
   0x6   : > { %p328_p3 = pnand %p773_p1, %p327_p2 }
   0x7   : > { %p374_p4 = scmp.lt.s32.totalorder (!%p328_p3), %s930_s30, 1  ;;  %p396_p5 = scmp.eq.s32.totalorder (!%p328_p3), %s930_s30, 0 }
   0x8   : > { %331 = sbr.rel (%p328_p3) target bundleno = 1232 (0x4d0), region = 56  ;;  %s943_s28 = smov (!%p328_p3), 0.0  }
   0x9   : > { %p668_p6 = scmp.eq.s32.totalorder (!%p328_p3), %s930_s30, 1 }
   0xd   : > { %v876_v0 = vld [vmem:[%s1092_s1 + $0x8] sm:$0xff]   ;;  %v940_v1 = vmov 0.0   ;;  %v877_v2 = vld [vmem:[%s1092_s1] sm:$0xff]   ;;  %vm941_vm0 = vmmov 0   ;;  %s1024_s18 = scalar_select %p374_p4, %s930_s30, 1  ;;  %vm430_vm1 = vcmask 261120   ;;  %v614_v27 = vlaneseq }
   0xe   : > { %808 = vmatprep.subr.bf16.mxu0 %v940_v1  ;;  %816 = vmatprep.subr.bf16.mxu1 %v940_v1  ;;  %v878_v4 = vld [vmem:[%s1094_s3 + $0x8] sm:$0xff]   ;;  %v879_v5 = vld [vmem:[%s1094_s3] sm:$0xff]   ;;  %v942_v26 = vmov 0   ;;  %vm640_vm6 = vcmask 7168   ;;  %838 = sst [smem:[#allocation2]] (%p396_p5), %s943_s28  ;;  %vm680_vm7 = vcmask (%p668_p6), 0  }
   0xf   : > { %809 = vmatpush3.bf16.msra.mxu0 %v876_v0  ;;  %812 = vmatprep.mubr.msk.bf16.mxu0 %vm941_vm0, %v940_v1  ;;  %s774_s19 = sshll.u32 %s1024_s18, 2  ;;  %v778_v6 = vld [vmem:[%s1093_s2] ss:$0 sm:$0xff]  ;;  %v880_v15 = vld [vmem:[%s1096_s5 + $0x8] sm:$0xff]   ;;  %v615_v28 = vand.u32 127, %v614_v27  ;;  %839 = sst [smem:[#allocation2 + $0x1]] (%p396_p5), %s943_s28 }
  0x10   : > { %810 = vmatprep.subr.bf16.mxu0 %v940_v1  ;;  %820 = vmatprep.mubr.msk.bf16.mxu1 %vm941_vm0, %v940_v1  ;;  %s380_s22 = scalar_lea.vmem %s1091_s0, %s774_s19  ;;  %v881_v16 = vld [vmem:[%s1096_s5] sm:$0xff]   ;;  %s638_s29 = sld [smem:[#allocation2]] }
  0x11   : > { %v406_v3 = vld [vmem:[%s380_s22] sm:$0xf]  ;;  %817 = vmatpush3.bf16.msra.mxu1 %v878_v4  ;;  %875 = vset.pattern.permute.xlu0 %v942_v26  ;;  %vm616_vm4 = vcmp.lt.s32.totalorder %v615_v28, 10  ;;  %s775_s22 = sshll.u32 %s1024_s18, 3  ;;  %s790_s14 = sld [smem:[#allocation2 + $0x1]] }
  0x12   : > { %818 = vmatprep.subr.bf16.mxu1 %v940_v1  ;;  %v782_v17 = vld [vmem:[%s1095_s4] ss:$0 sm:$0xff]  ;;  %s387_s25 = scalar_lea.vmem %s1098_s7, %s775_s22  ;;  %s394_s27 = scalar_lea.vmem %s1099_s8, %s775_s22 }
  0x13   : > { %811 = vmatpush3.bf16.msra.mxu0 %v877_v2  ;;  %v786_v29 = vld [vmem:[%s1097_s6] ss:$0 sm:$0xff] }
  0x14   : > { %824 = vmatprep.subr.bf16.mxu0 %v940_v1  ;;  %v618_v36 = vld [vmem:[%s387_s25] sm:$0xff] }
  0x15   : > { %819 = vmatpush3.bf16.msra.mxu1 %v879_v5  ;;  %v619_v48 = vld [vmem:[%s394_s27] sm:$0xff] }
  0x16   : > { %813 = vmatmul.mubr.msk.bf16.vlgmr.msra.gmra.mxu0 %vm430_vm1, %v406_v3  ;;  %v655_v52 = vsel %vm640_vm6, %v619_v48, 0.0 }
  0x17   : > { %828 = vmatprep.mubr.msk.bf16.mxu0 %vm941_vm0, %v940_v1  ;;  %825 = vmatpush3.bf16.msra.mxu0 %v880_v15 }
  0x18   : > { %826 = vmatprep.subr.bf16.mxu0 %v940_v1 }
  0x1b   : > { %827 = vmatpush3.bf16.msra.mxu0 %v881_v16 }
  0xd6   : > { %v468_v7 = vpop.f32.mrf.mxu0 }
  0xd7   : > { %v469_v8 = vadd.f32 %v778_v6, %v468_v7 }
  0xd8   : > { %v814_v9 = vpop.f32.mrf.mxu0 }
  0xd9   : > { %vm474_vm2 = vcmp.ge.f32.partialorder %v469_v8, 0.0  ;;  %v475_v10 = vmul.f32 0.01, %v469_v8 }
  0xda   : > { %v471_v11 = vpop.f32.mrf.mxu0 }
  0xdb   : > { %v476_v12 = vsel %vm474_vm2, %v469_v8, %v475_v10 }
  0xdc   : > { %v477_v13 = vpack.c.bf16 %v476_v12, %v476_v12  ;;  %v815_v14 = vpop.f32.mrf.mxu0 }
  0xde   : > { %821 = vmatmul.mubr.msk.bf16.vlgmr.msra.gmra.mxu1 %vm430_vm1, %v477_v13 }
 0x19e   : > { %v538_v18 = vpop.f32.mrf.mxu1 }
 0x19f   : > { %v539_v19 = vadd.f32 %v782_v17, %v538_v18 }
 0x1a0   : > { %v822_v20 = vpop.f32.mrf.mxu1 }
 0x1a1   : > { %vm544_vm3 = vcmp.ge.f32.partialorder %v539_v19, 0.0  ;;  %v545_v21 = vmul.f32 0.01, %v539_v19 }
 0x1a2   : > { %v541_v22 = vpop.f32.mrf.mxu1 }
 0x1a3   : > { %v546_v23 = vsel %vm544_vm3, %v539_v19, %v545_v21 }
 0x1a4   : > { %v547_v24 = vpack.c.bf16 %v546_v23, %v546_v23  ;;  %v823_v25 = vpop.f32.mrf.mxu1 }
 0x1a6   : > { %829 = vmatmul.mubr.msk.bf16.vlgmr.msra.gmra.mxu0 %vm430_vm1, %v547_v24 }
 0x266   : > { %v608_v30 = vpop.f32.mrf.mxu0 }
 0x267   : > { %v609_v31 = vadd.f32 %v786_v29, %v608_v30 }
 0x268   : > { %v830_v32 = vpop.f32.mrf.mxu0 }
 0x269   : > { %v617_v33 = vsel %vm616_vm4, %v609_v31, -1e+30 }
 0x26a   : > { %620 = vmax.xlane.f32.xlu0 %v617_v33  ;;  %v611_v34 = vpop.f32.mrf.mxu0 }
 0x26c   : > { %v831_v35 = vpop.f32.mrf.mxu0 }
 0x280   : > { %631 = vperm.xlu0 %875, %v618_v36  }
 0x2f3   : > { %v621_v37 = vpop.xlane.xlu0 %620 }
 0x2f4   : > { %v622_v38 = vsub.f32 %v617_v33, %v621_v37 }
 0x2f6   : > { %v623_v39 = vmul.f32 1.442695, %v622_v38 }
 0x2f8   : > { %882 = vpow2.f32 %v623_v39 }
 0x2fb   : > { %v632_v40 = vpop.permute.xlu0 %631 }
 0x2fc   : > { %vm633_vm5 = vcmp.eq.s32.totalorder %v615_v28, %v632_v40 }
 0x2fd   : > { %v634_v42 = vsel %vm633_vm5, %v617_v33, 0.0 }
 0x305   : > { %v883_v41 = vpop.eup %882 }
 0x306   : > { %625 = vadd.xlane.f32.xlu1 %v883_v41 }
 0x30a   : > { %635 = vadd.xlane.f32.xlu1 %v634_v42 }
 0x38f   : > { %v626_v43 = vpop.xlane.xlu1 %625 }
 0x390   : > { %884 = vlog2.f32 %v626_v43 }
 0x393   : > { %v636_v47 = vpop.xlane.xlu1 %635 }
 0x39d   : > { %v885_v44 = vpop.eup %884 }
 0x39e   : > { %v628_v45 = vmul.f32 0.6931472, %v885_v44 }
 0x3a0   : > { %v629_v46 = vadd.f32 %v628_v45, %v621_v37 }
 0x3a2   : > { %v637_v49 = vsub.f32 %v629_v46, %v636_v47 }
 0x3a4   : > { %v639_v50 = vmul.f32 %v637_v49, %v619_v48 }
 0x3a6   : > { %v641_v51 = vsel %vm640_vm6, %v639_v50, 0.0 }
 0x3a7   : > { %642 = vadd.xlane.f32.xlu1 %v641_v51 }
 0x3ab   : > { %656 = vadd.xlane.f32.xlu1 %v655_v52 }
 0x430   : > { %v643_v53 = vpop.xlane.xlu1 %642 }
 0x431   : > { %v644_v54 = vrot.slane %v643_v53, 4 }
 0x433   : > { %v645_v55 = vadd.f32 %v644_v54, %v643_v53 }
 0x434   : > { %v657_v56 = vpop.xlane.xlu1 %656 }
 0x435   : > { %v646_v57 = vrot.slane %v645_v55, 2  ;;  %v658_v58 = vrot.slane %v657_v56, 4 }
 0x437   : > { %v659_v59 = vadd.f32 %v658_v58, %v657_v56  ;;  %v647_v60 = vadd.f32 %v646_v57, %v645_v55 }
 0x439   : > { %v660_v61 = vrot.slane %v659_v59, 2  ;;  %v648_v62 = vrot.slane %v647_v60, 1 }
 0x43b   : > { %v661_v63 = vadd.f32 %v660_v61, %v659_v59  ;;  %v649_v0 = vadd.f32 %v648_v62, %v647_v60 }
 0x43d   : > { %832 = vpush %v649_v0  ;;  %v662_v1 = vrot.slane %v661_v63, 1 }
 0x43f   : > { %v663_v2 = vadd.f32 %v662_v1, %v661_v63 }
 0x441   : > { %834 = vpush %v663_v2 }
 0x46e   : > { %s833_s15 = spop %832 }
 0x46f   : > { %s651_s16 = sadd.f32 %s833_s15, %s638_s29 }
 0x471   : > { %653 = sst [smem:[#allocation2]] %s651_s16  ;;  %672 = sbr.rel (!%p668_p6) target bundleno = 1217 (0x4c1), region = 64 }
 0x472   : > { %s835_s17 = spop %834  ;;  %s673_s21 = sld [smem:[#allocation2]] (%p668_p6) }
 0x473   : > { %s665_s19 = sadd.f32 %s835_s17, %s790_s14 }
 0x475   : > { %667 = sst [smem:[#allocation2 + $0x1]] %s665_s19 }
 0x476   : > { %s792_s20 = sld [smem:[#allocation2 + $0x1]] }
 0x47c   : > { %v675_v3 = vstv %s792_s20 }
 0x47d   : > { %886 = vrcp.f32 %v675_v3 }
 0x48a   : > { %v887_v4 = vpop.eup %886 }
 0x48b   : > { %836 = vpush %v887_v4 }
 0x4bc   : > { %s837_s22 = spop %836 }
 0x4bd   : > { %s678_s23 = smul.f32 %s837_s22, %s673_s21 }
 0x4bf   : > { %v679_v5 = vstv %s678_s23 }
 0x4c0   : > { %681 = vst.msk [vmem:[#allocation3] sm:$0x1] %vm680_vm7, %v679_v5 }
 0x4c1 PF: > { %p1067_p7 = scmp.eq.s32.totalorder %s770_s12, 1  ;;  %s944_s30 = smov [#allocation3]  }
 0x4c2   : > { %s689_s25 = sshll.u32 %s944_s30, 4  ;;  %s690_s25 = int_to_ptr.vmem [resolvable:$true] %s689_s25 }
 0x4c3   : > { %s888_s18 = scalar_lea.vmem %s690_s25, 16  ;;  %s894_s26 = scalar_lea.vmem %s690_s25, 32 }
 0x4c4   : > { %p889_p8 = scmp.ne.s32.totalorder %s690_s25, %s888_s18  ;;  %p895_p11 = scmp.lt.s32.totalorder %s690_s25, %s690_s25 }
 0x4c5   : > { %p896_p12 = scmp.lt.s32.totalorder %s894_s26, %s888_s18 }
 0x4c6   : > { %p890_p9 = pnand %p889_p8, %p1067_p7 }
 0x4c7   : > { %p897_p13 = por %p896_p12, %p895_p11 }
 0x4c8   : > { %p891_p10 = pneg %p890_p9 }
 0x4ca   : > { %p898_p0 = pnand %p897_p13, %p891_p10 }
 0x4cc   : > { %901 = shalt.err (!%p898_p0)
}
 0x4cd   : > { %841 = dma.vmem_to_hbm [thread:$0]  (%p1067_p7), %s690_s25, 16, %s1100_s9, [#allocation4]  }
 0x4ce   : > { %925 = dma.done.wait (%p1067_p7), [#allocation4], 16  }
 0x4cf   : > { %927 = vsyncadd (%p1067_p7), [#allocation4], 4294967280 }
 0x4d0 PF: > { %s20_s11 = sadd.s32 1, %s938_s11   ;;  %s1102_s30 = smov %s934_s10 }
 0x4d1   : > { %p17_p1 = scmp.ge.s32.totalorder %s20_s11, 4   ;;  %s1103_s10 = smov %s1105_s13 }
 0x4d3   :  { %19 = sbr.rel (!%p17_p1) target bundleno = 2 (0x2), region = 101 }
 0x4d8   :  { %702 = vsyncpa [#allocation4], 1 }
 0x4d9   :  { %704 = vsyncpa [#allocation4 + $0x1], 1 }

// kernel: transformer_forward.5
= control target key start
LH: loop header
LB: loop body
LE: loop exit
PB: predicated region body
PF: predicated region fallthrough
CT: control target
= control target key end

     0   :  { %s1876_s18 = smov 0   ;;  %s1878_s19 = smov 0   ;;  %s2075_s0 = inlined_call_operand.vmem [shape: bf16[2,8,32], index: 0, kind: input, shape index: {}, may-alias: {0,1}]   ;;  %s2076_s1 = inlined_call_operand.vmem [shape: bf16[2,8,32], index: 1, kind: input, shape index: {}, may-alias: {0,1}]   ;;  %s2077_s2 = inlined_call_operand.vmem [shape: f32[2,1,8], index: 2, kind: input, shape index: {}]   ;;  %s2078_s3 = inlined_call_operand.vmem [shape: bf16[32,96], index: 3, kind: input, shape index: {}]   ;;  %s2079_s4 = inlined_call_operand.vmem [shape: f32[1,96], index: 4, kind: input, shape index: {}]   ;;  %s2080_s5 = inlined_call_operand.vmem [shape: bf16[32,32], index: 5, kind: input, shape index: {}]   ;;  %s2081_s6 = inlined_call_operand.vmem [shape: f32[1,32], index: 6, kind: input, shape index: {}]   ;;  %s2082_s7 = inlined_call_operand.vmem [shape: f32[1,32], index: 7, kind: input, shape index: {}]   ;;  %s2083_s8 = inlined_call_operand.vmem [shape: f32[1,32], index: 8, kind: input, shape index: {}]   ;;  %s2084_s9 = inlined_call_operand.vmem [shape: bf16[32,64], index: 9, kind: input, shape index: {}]   ;;  %s2085_s10 = inlined_call_operand.vmem [shape: f32[1,64], index: 10, kind: input, shape index: {}]   ;;  %s2086_s11 = inlined_call_operand.vmem [shape: bf16[64,32], index: 11, kind: input, shape index: {}]   ;;  %s2087_s12 = inlined_call_operand.vmem [shape: f32[1,32], index: 12, kind: input, shape index: {}]   ;;  %s2088_s13 = inlined_call_operand.vmem [shape: f32[1,32], index: 13, kind: input, shape index: {}]   ;;  %s2089_s14 = inlined_call_operand.vmem [shape: f32[1,32], index: 14, kind: input, shape index: {}]   ;;  %s2090_s15 = inlined_call_operand.vmem [shape: bf16[2,8,32], index: 15, kind: output, shape index: {}]  }
   0x1   :  { %s1880_s20 = smov 0  }
   0x2 LB: > { %s37_s21 = sadd.s32 1, %s1778_s19  ;;  %p1531_p0 = scmp.ge.s32.totalorder %s1782_s20, 1  ;;  %s1782_s20 = sphi %s1880_s20, %s25_s20   ;;  %s1778_s19 = sphi %s1878_s19, %s2092_s19   ;;  %s1774_s18 = sphi %s1876_s18, %s2091_s18  }
   0x3   : > { %p39_p1 = scmp.ge.s32.totalorder %s37_s21, 2  ;;  %p472_p2 = scmp.lt.s32.totalorder %s1782_s20, 3 }
   0x5   : > { %s2094_s21 = smov (%p39_p1, %s37_s21), 0  ;;  %p473_p3 = pnand %p1531_p0, %p472_p2 }
   0x6   : > { %s1784_s24 = smov (!%p473_p3), 96   ;;  %p531_p4 = scmp.lt.s32.totalorder (!%p473_p3), %s1774_s18, 1 }
   0x7   : > { %476 = sbr.rel (%p473_p3) target bundleno = 2358 (0x936), region = 80  ;;  %s1787_s26 = smov (!%p473_p3), 120  }
   0x8   : > { %s1788_s27 = smov (!%p473_p3), 112   ;;  %s1789_s28 = smov (!%p473_p3), 104  }
   0x9   : > { %s1790_s22 = smov (!%p473_p3), 88   ;;  %s1792_s23 = smov (!%p473_p3), 72  }
   0xa   : > { %s1794_s30 = smov (!%p473_p3), 16   ;;  %s1795_s16 = smov (!%p473_p3), 24  }
   0xc   : > { %v1730_v0 = vld [vmem:[%s2078_s3 + $0x8] sm:$0xff]   ;;  %v1731_v1 = vld [vmem:[%s2078_s3] sm:$0xff]   ;;  %v1785_v2 = vmov 0.0   ;;  %vm1786_vm0 = vmmov 0   ;;  %s2096_s18 = smov (!%p531_p4, %s1774_s18), 1  ;;  %vm579_vm1 = vcmask 261120  }
   0xd   : > { %625 = vrot.lane.b32.xlu0 %v1730_v0, %s1784_s24  ;;  %1602 = vmatprep.subr.bf16.mxu1 %v1785_v2  ;;  %v1535_v3 = vld [vmem:[%s2079_s4] ss:$0 sm:$0xff]  ;;  %s1916_s29 = sshll.u32 %s2096_s18, 2  ;;  %vm677_vm2 = vcmask 64512   ;;  %vm748_vm3 = vcmask 1043456   ;;  %vm1144_vm4 = vcmask 130048  }
   0xe   : > { %1603 = vmatpush3.bf16.msra.mxu1 %v1730_v0  ;;  %1606 = vmatprep.mubr.msk.bf16.mxu1 %vm1786_vm0, %v1785_v2  ;;  %s541_s17 = scalar_lea.vmem %s2076_s1, %s1916_s29  ;;  %s534_s25 = scalar_lea.vmem %s2075_s0, %s1916_s29  ;;  %vm1146_vm5 = vcmask 195584   ;;  %vm1355_vm6 = vcmask 523264   ;;  %vm1430_vm7 = vcmask 257024  }
   0xf   : > { %1604 = vmatprep.subr.bf16.mxu1 %v1785_v2  ;;  %629 = vrot.lane.b32.xlu1 %v1535_v3, %s1784_s24  ;;  %v1922_v4 = vld [vmem:[%s541_s17] sm:$0xf]  ;;  %s544_s17 = scalar_lea.vmem %s2077_s2, %s2096_s18  ;;  %s1791_s18 = smov 80  }
  0x10   : > { %1618 = vmatprep.subr.bf16.mxu0 %v1785_v2  ;;  %1620 = vmatprep.mubr.msk.bf16.mxu0 %vm1786_vm0, %v1785_v2  ;;  %v553_v7 = vld [vmem:[%s534_s25] sm:$0xf] }
  0x11   : > { %623 = vrot.lane.b32.xlu0 %v1731_v1, %s1784_s24  ;;  %v1541_v32 = vld [vmem:[%s544_s17] ss:$0 sm:$0xff] }
  0x12   : > { %1605 = vmatpush3.bf16.msra.mxu1 %v1731_v1 }
  0x13   : > { %1610 = vmatprep.subr.bf16.mxu1 %v1785_v2 }
  0x15   : > { %1607 = vmatmul.mubr.msk.bf16.vlgmr.msra.gmra.mxu1 %vm579_vm1, %v1922_v4 }
  0x16   : > { %1614 = vmatprep.mubr.msk.bf16.mxu1 %vm1786_vm0, %v1785_v2 }
  0x7f   : > { %v626_v5 = vpop.permute.xlu0 %625 }
  0x80   : > { %1611 = vmatpush3.bf16.msra.mxu1 %v626_v5 }
  0x81   : > { %1612 = vmatprep.subr.bf16.mxu1 %v1785_v2  ;;  %v630_v14 = vpop.permute.xlu1 %629 }
  0x83   : > { %v624_v6 = vpop.permute.xlu0 %623 }
  0x84   : > { %1613 = vmatpush3.bf16.msra.mxu1 %v624_v6 }
  0x85   : > { %1624 = vmatprep.subr.bf16.mxu1 %v1785_v2 }
  0x87   : > { %1615 = vmatmul.mubr.msk.bf16.vlgmr.msra.gmra.mxu1 %vm579_vm1, %v553_v7 }
  0x88   : > { %1626 = vmatprep.mubr.msk.bf16.mxu1 %vm1786_vm0, %v1785_v2 }
  0xd5   : > { %v617_v8 = vpop.f32.mrf.mxu1 }
  0xd6   : > { %v618_v9 = vadd.f32 %v1535_v3, %v617_v8 }
  0xd7   : > { %v1608_v10 = vpop.f32.mrf.mxu1 }
  0xd8   : > { %v676_v11 = vpack.c.bf16 %v618_v9, %v618_v9 }
  0xd9   : > { %v620_v12 = vpop.f32.mrf.mxu1 }
  0xda   : > { %795 = vrot.lane.b32.xlu0 %v676_v11, %s1787_s26 }
  0xdb   : > { %v1609_v13 = vpop.f32.mrf.mxu1 }
  0xde   : > { %907 = vrot.lane.b32.xlu0 %v676_v11, %s1788_s27 }
  0xe2   : > { %1019 = vrot.lane.b32.xlu0 %v676_v11, %s1789_s28 }
 0x147   : > { %v669_v15 = vpop.f32.mrf.mxu1 }
 0x148   : > { %v670_v16 = vadd.f32 %v669_v15, %v630_v14 }
 0x149   : > { %v1616_v17 = vpop.f32.mrf.mxu1 }
 0x14a   : > { %v1938_v18 = vpack.c.bf16 %v670_v16, %v670_v16 }
 0x14b   : > { %v672_v19 = vpop.f32.mrf.mxu1 }
 0x14c   : > { %797 = vrot.lane.b32.xlu1 %v1938_v18, %s1787_s26  ;;  %v682_v20 = vsel %vm677_vm2, %v1938_v18, 0  ;;  %v796_v25 = vpop.permute.xlu0 %795  ;;  %s1793_s26 = smov 8  }
 0x14d   : > { %v1617_v21 = vpop.f32.mrf.mxu1  ;;  %1619 = vmatpush3.bf16.xpose.msra.mxu0 %v682_v20 }
 0x14e   : > { %1630 = vmatprep.subr.bf16.mxu0 %v1785_v2 }
 0x150   : > { %909 = vrot.lane.b32.xlu1 %v1938_v18, %s1788_s27  ;;  %v908_v28 = vpop.permute.xlu0 %907 }
 0x154   : > { %1021 = vrot.lane.b32.xlu1 %v1938_v18, %s1789_s28  ;;  %1621 = vmatmul.mubr.msk.bf16.vlgmr.msra.gmra.mxu0 %vm677_vm2, %v676_v11  ;;  %v1020_v30 = vpop.permute.xlu0 %1019 }
 0x155   : > { %1632 = vmatprep.mubr.msk.bf16.mxu0 %vm1786_vm0, %v1785_v2 }
 0x1be   : > { %v798_v22 = vpop.permute.xlu1 %797 }
 0x1bf   : > { %v803_v23 = vsel %vm677_vm2, %v798_v22, 0 }
 0x1c0   : > { %1631 = vmatpush3.bf16.xpose.msra.mxu0 %v803_v23 }
 0x1c1   : > { %1642 = vmatprep.subr.bf16.mxu0 %v1785_v2 }
 0x1c2   : > { %v910_v24 = vpop.permute.xlu1 %909 }
 0x1c3   : > { %v915_v26 = vsel %vm677_vm2, %v910_v24, 0 }
 0x1c6   : > { %v1022_v27 = vpop.permute.xlu1 %1021 }
 0x1c7   : > { %1633 = vmatmul.mubr.msk.bf16.vlgmr.msra.gmra.mxu0 %vm677_vm2, %v796_v25  ;;  %v1027_v29 = vsel %vm677_vm2, %v1022_v27, 0 }
 0x1c8   : > { %1643 = vmatpush3.bf16.xpose.msra.mxu0 %v915_v26  ;;  %1644 = vmatprep.mubr.msk.bf16.mxu0 %vm1786_vm0, %v1785_v2 }
 0x1c9   : > { %1654 = vmatprep.subr.bf16.mxu0 %v1785_v2 }
 0x1cf   : > { %1645 = vmatmul.mubr.msk.bf16.vlgmr.msra.gmra.mxu0 %vm677_vm2, %v908_v28 }
 0x1d0   : > { %1655 = vmatpush3.bf16.xpose.msra.mxu0 %v1027_v29  ;;  %1656 = vmatprep.mubr.msk.bf16.mxu0 %vm1786_vm0, %v1785_v2 }
 0x1d1   : > { %1666 = vmatprep.subr.bf16.mxu0 %v1785_v2 }
 0x1d7   : > { %1657 = vmatmul.mubr.msk.bf16.vlgmr.msra.gmra.mxu0 %vm677_vm2, %v1020_v30 }
 0x1d8   : > { %1670 = vmatprep.mubr.msk.bf16.mxu0 %vm1786_vm0, %v1785_v2 }
 0x214   : > { %v718_v31 = vpop.f32.mrf.mxu0 }
 0x215   : > { %v724_v33 = vmul.f32 0.35355338, %v718_v31 }
 0x216   : > { %v1622_v34 = vpop.f32.mrf.mxu0 }
 0x217   : > { %v731_v35 = vadd.f32 %v1541_v32, %v724_v33 }
 0x218   : > { %v721_v36 = vpop.f32.mrf.mxu0 }
 0x219   : > { %v732_v37 = vsel %vm677_vm2, %v731_v35, -inf  ;;  %v1732_v36 = vld [vmem:[%s2080_s5 + $0x8] sm:$0xff]  }
 0x21a   : > { %733 = vmax.xlane.f32.xlu1 %v732_v37  ;;  %v1623_v38 = vpop.f32.mrf.mxu0  ;;  %1667 = vmatpush3.bf16.msra.mxu0 %v1732_v36 }
 0x21b   : > { %1668 = vmatprep.subr.bf16.mxu0 %v1785_v2 }
 0x22b   : > { %857 = vrot.lane.b32.xlu1 %v1938_v18, %s1790_s22 }
 0x287   : > { %v839_v39 = vpop.f32.mrf.mxu0 }
 0x288   : > { %v845_v40 = vmul.f32 0.35355338, %v839_v39 }
 0x289   : > { %v1634_v41 = vpop.f32.mrf.mxu0 }
 0x28a   : > { %v846_v42 = vadd.f32 %v1541_v32, %v845_v40 }
 0x28b   : > { %v842_v43 = vpop.f32.mrf.mxu0 }
 0x28c   : > { %v847_v44 = vsel %vm677_vm2, %v846_v42, -inf  ;;  %v1733_v43 = vld [vmem:[%s2080_s5] sm:$0xff]  }
 0x28d   : > { %848 = vmax.xlane.f32.xlu0 %v847_v44  ;;  %v1635_v45 = vpop.f32.mrf.mxu0  ;;  %1669 = vmatpush3.bf16.msra.mxu0 %v1733_v43 }
 0x28e   : > { %1682 = vmatprep.subr.bf16.mxu0 %v1785_v2 }
 0x28f   : > { %v951_v46 = vpop.f32.mrf.mxu0 }
 0x290   : > { %v957_v47 = vmul.f32 0.35355338, %v951_v46 }
 0x291   : > { %v1646_v48 = vpop.f32.mrf.mxu0 }
 0x292   : > { %v958_v49 = vadd.f32 %v1541_v32, %v957_v47 }
 0x293   : > { %v954_v50 = vpop.f32.mrf.mxu0 }
 0x294   : > { %v959_v51 = vsel %vm677_vm2, %v958_v49, -inf }
 0x295   : > { %960 = vmax.xlane.f32.xlu0 %v959_v51  ;;  %v1647_v52 = vpop.f32.mrf.mxu0 }
 0x297   : > { %v1063_v53 = vpop.f32.mrf.mxu0 }
 0x298   : > { %v1069_v54 = vmul.f32 0.35355338, %v1063_v53 }
 0x299   : > { %v1658_v55 = vpop.f32.mrf.mxu0 }
 0x29a   : > { %v1070_v56 = vadd.f32 %v1541_v32, %v1069_v54 }
 0x29b   : > { %v1066_v57 = vpop.f32.mrf.mxu0 }
 0x29c   : > { %v1071_v58 = vsel %vm677_vm2, %v1070_v56, -inf }
 0x29d   : > { %1072 = vmax.xlane.f32.xlu1 %v1071_v58  ;;  %v1659_v59 = vpop.f32.mrf.mxu0 }
 0x2a3   : > { %v734_v60 = vpop.xlane.xlu1 %733 }
 0x2a4   : > { %v735_v61 = vsub.f32 %v731_v35, %v734_v60 }
 0x2a6   : > { %v736_v62 = vmul.f32 1.442695, %v735_v61 }
 0x2a7   : > { %v858_v8 = vpop.permute.xlu1 %857 }
 0x2a8   : > { %1740 = vpow2.f32 %v736_v62  ;;  %v863_v13 = vsel %vm748_vm3, %v858_v8, 0 }
 0x2ab   : > { %743 = vrot.lane.b32.xlu0 %v1938_v18, %s1784_s24 }
 0x2ae   : > { %969 = vrot.lane.b32.xlu1 %v1938_v18, %s1791_s18 }
 0x2af   : > { %1081 = vrot.lane.b32.xlu0 %v1938_v18, %s1792_s23 }
 0x2b5   : > { %v1741_v7 = vpop.eup %1740 }
 0x2b6   : > { %v741_v11 = vpack.c.bf16 %v1741_v7, %v1741_v7  ;;  %v738_v19 = vsel %vm677_vm2, %v1741_v7, 0.0 }
 0x316   : > { %v849_v63 = vpop.xlane.xlu0 %848 }
 0x317   : > { %v850_v0 = vsub.f32 %v846_v42, %v849_v63 }
 0x319   : > { %v851_v1 = vmul.f32 1.442695, %v850_v0 }
 0x31b   : > { %1742 = vpow2.f32 %v851_v1 }
 0x31e   : > { %v961_v3 = vpop.xlane.xlu0 %960 }
 0x31f   : > { %v962_v5 = vsub.f32 %v958_v49, %v961_v3 }
 0x321   : > { %v963_v6 = vmul.f32 1.442695, %v962_v5  ;;  %v1549_v5 = vld [vmem:[%s2081_s6] ss:$0 sm:$0xff] }
 0x322   : > { %v744_v9 = vpop.permute.xlu0 %743 }
 0x323   : > { %1744 = vpow2.f32 %v963_v6  ;;  %v750_v10 = vsel %vm748_vm3, %v744_v9, 0  ;;  %v1215_v6 = vunpack.c.l.bf16 %v1922_v4  ;;  %v1734_v4 = vld [vmem:[%s2084_s9 + $0x8] sm:$0xff]  }
 0x324   : > { %1625 = vmatpush3.bf16.msra.mxu1 %v750_v10 }
 0x325   : > { %1636 = vmatprep.subr.bf16.mxu1 %v1785_v2 }
 0x326   : > { %v1073_v12 = vpop.xlane.xlu1 %1072  ;;  %v1082_v24 = vpop.permute.xlu0 %1081 }
 0x327   : > { %v1074_v14 = vsub.f32 %v1070_v56, %v1073_v12  ;;  %1627 = vmatmul.mubr.msk.bf16.vlgmr.msra.gmra.mxu1 %vm677_vm2, %v741_v11  ;;  %v1087_v26 = vsel %vm748_vm3, %v1082_v24, 0 }
 0x328   : > { %v1743_v15 = vpop.eup %1742  ;;  %1637 = vmatpush3.bf16.msra.mxu1 %v863_v13  ;;  %1638 = vmatprep.mubr.msk.bf16.mxu1 %vm1786_vm0, %v1785_v2 }
 0x329   : > { %v1075_v16 = vmul.f32 1.442695, %v1074_v14  ;;  %v853_v17 = vsel %vm677_vm2, %v1743_v15, 0.0  ;;  %1648 = vmatprep.subr.bf16.mxu1 %v1785_v2  ;;  %v856_v20 = vpack.c.bf16 %v1743_v15, %v1743_v15 }
 0x32a   : > { %854 = vadd.xlane.f32.xlu1 %v853_v17  ;;  %v970_v18 = vpop.permute.xlu1 %969 }
 0x32b   : > { %1746 = vpow2.f32 %v1075_v16  ;;  %v975_v21 = vsel %vm748_vm3, %v970_v18, 0 }
 0x32e   : > { %739 = vadd.xlane.f32.xlu1 %v738_v19  ;;  %v1735_v19 = vld [vmem:[%s2084_s9] sm:$0xff]  }
 0x32f   : > { %1639 = vmatmul.mubr.msk.bf16.vlgmr.msra.gmra.mxu1 %vm677_vm2, %v856_v20  ;;  %v1736_v20 = vld [vmem:[%s2086_s11 + $0x18] sm:$0xff]  }
 0x330   : > { %v1745_v22 = vpop.eup %1744  ;;  %1649 = vmatpush3.bf16.msra.mxu1 %v975_v21  ;;  %1650 = vmatprep.mubr.msk.bf16.mxu1 %vm1786_vm0, %v1785_v2  ;;  %v1737_v21 = vld [vmem:[%s2086_s11 + $0x10] sm:$0xff]  }
 0x331   : > { %v965_v23 = vsel %vm677_vm2, %v1745_v22, 0.0  ;;  %1660 = vmatprep.subr.bf16.mxu1 %v1785_v2  ;;  %v968_v25 = vpack.c.bf16 %v1745_v22, %v1745_v22 }
 0x332   : > { %966 = vadd.xlane.f32.xlu0 %v965_v23 }
 0x337   : > { %1651 = vmatmul.mubr.msk.bf16.vlgmr.msra.gmra.mxu1 %vm677_vm2, %v968_v25 }
 0x338   : > { %v1747_v27 = vpop.eup %1746  ;;  %1661 = vmatpush3.bf16.msra.mxu1 %v1087_v26  ;;  %1662 = vmatprep.mubr.msk.bf16.mxu1 %vm1786_vm0, %v1785_v2  ;;  %v1553_v26 = vld [vmem:[%s2082_s7] ss:$0 sm:$0xff] }
 0x339   : > { %v1077_v28 = vsel %vm677_vm2, %v1747_v27, 0.0  ;;  %1674 = vmatprep.subr.bf16.mxu1 %v1785_v2  ;;  %v1080_v29 = vpack.c.bf16 %v1747_v27, %v1747_v27 }
 0x33a   : > { %1078 = vadd.xlane.f32.xlu0 %v1077_v28  ;;  %v1554_v28 = vld [vmem:[%s2083_s8] ss:$0 sm:$0xff] }
 0x33f   : > { %1663 = vmatmul.mubr.msk.bf16.vlgmr.msra.gmra.mxu1 %vm677_vm2, %v1080_v29 }
 0x340   : > { %1678 = vmatprep.mubr.msk.bf16.mxu1 %vm1786_vm0, %v1785_v2  ;;  %1675 = vmatpush3.bf16.msra.mxu1 %v1734_v4 }
 0x341   : > { %1676 = vmatprep.subr.bf16.mxu1 %v1785_v2 }
 0x344   : > { %1677 = vmatpush3.bf16.msra.mxu1 %v1735_v19 }
 0x3b3   : > { %v855_v30 = vpop.xlane.xlu1 %854 }
 0x3b4   : > { %1748 = vrcp.f32 %v855_v30 }
 0x3b7   : > { %v740_v57 = vpop.xlane.xlu1 %739 }
 0x3bb   : > { %v967_v31 = vpop.xlane.xlu0 %966 }
 0x3bc   : > { %1750 = vrcp.f32 %v967_v31 }
 0x3c1   : > { %v1749_v37 = vpop.eup %1748 }
 0x3c3   : > { %v1079_v38 = vpop.xlane.xlu0 %1078 }
 0x3c4   : > { %1752 = vrcp.f32 %v1079_v38 }
 0x3c5   : > { %1754 = vrcp.f32 %v740_v57 }
 0x3c9   : > { %v1751_v45 = vpop.eup %1750 }
 0x3d1   : > { %v1753_v51 = vpop.eup %1752 }
 0x3d2   : > { %v1755_v58 = vpop.eup %1754 }
 0x3e7   : > { %v786_v32 = vpop.f32.mrf.mxu1 }
 0x3e8   : > { %v793_v61 = vmul.f32 %v1755_v58, %v786_v32  ;;  %v1738_v32 = vld [vmem:[%s2086_s11 + $0x8] sm:$0xff]   ;;  %v1565_v58 = vld [vmem:[%s2088_s13] ss:$0 sm:$0xff] }
 0x3e9   : > { %v1628_v33 = vpop.f32.mrf.mxu1 }
 0x3ea   : > { %v1739_v33 = vld [vmem:[%s2086_s11] sm:$0xff]  }
 0x3eb   : > { %v789_v34 = vpop.f32.mrf.mxu1 }
 0x3ec   : > { %v1555_v34 = vld [vmem:[%s2085_s10] ss:$0 sm:$0xff] }
 0x3ed   : > { %v1629_v35 = vpop.f32.mrf.mxu1 }
 0x3ef   : > { %v899_v39 = vpop.f32.mrf.mxu1 }
 0x3f0   : > { %v906_v40 = vmul.f32 %v1749_v37, %v899_v39 }
 0x3f1   : > { %v1640_v41 = vpop.f32.mrf.mxu1 }
 0x3f2   : > { %1132 = vrot.lane.b32.xlu0 %v906_v40, %s1793_s26  ;;  %s551_s26 = scalar_lea.vmem %s2090_s15, %s1916_s29 }
 0x3f3   : > { %v902_v42 = vpop.f32.mrf.mxu1 }
 0x3f5   : > { %v1641_v44 = vpop.f32.mrf.mxu1 }
 0x3f7   : > { %v1011_v46 = vpop.f32.mrf.mxu1 }
 0x3f8   : > { %v1018_v47 = vmul.f32 %v1751_v45, %v1011_v46 }
 0x3f9   : > { %v1652_v48 = vpop.f32.mrf.mxu1 }
 0x3fa   : > { %1136 = vrot.lane.b32.xlu1 %v1018_v47, %s1794_s30 }
 0x3fb   : > { %v1014_v49 = vpop.f32.mrf.mxu1 }
 0x3fd   : > { %v1653_v50 = vpop.f32.mrf.mxu1 }
 0x3ff   : > { %v1123_v52 = vpop.f32.mrf.mxu1 }
 0x400   : > { %v1130_v53 = vmul.f32 %v1753_v51, %v1123_v52 }
 0x401   : > { %v1664_v54 = vpop.f32.mrf.mxu1 }
 0x402   : > { %1140 = vrot.lane.b32.xlu1 %v1130_v53, %s1795_s16 }
 0x403   : > { %v1126_v55 = vpop.f32.mrf.mxu1 }
 0x405   : > { %v1665_v56 = vpop.f32.mrf.mxu1 }
 0x464   : > { %v1133_v59 = vpop.permute.xlu0 %1132 }
 0x465   : > { %v1143_v62 = vsel %vm677_vm2, %v793_v61, %v1133_v59 }
 0x46c   : > { %v1137_v60 = vpop.permute.xlu1 %1136 }
 0x46d   : > { %v1145_v63 = vsel %vm1144_vm4, %v1143_v62, %v1137_v60  ;;  %v1566_v60 = vld [vmem:[%s2089_s14] ss:$0 sm:$0xff] }
 0x474   : > { %v1141_v0 = vpop.permute.xlu1 %1140 }
 0x475   : > { %v1147_v1 = vsel %vm1146_vm5, %v1145_v63, %v1141_v0 }
 0x476   : > { %v1148_v3 = vpack.c.bf16 %v1147_v1, %v1147_v1 }
 0x478   : > { %1671 = vmatmul.mubr.msk.bf16.vlgmr.msra.gmra.mxu0 %vm579_vm1, %v1148_v3 }
 0x479   : > { %1690 = vmatprep.mubr.msk.bf16.mxu0 %vm1786_vm0, %v1785_v2  ;;  %1683 = vmatpush3.bf16.msra.mxu0 %v1736_v20 }
 0x47a   : > { %1684 = vmatprep.subr.bf16.mxu0 %v1785_v2 }
 0x47d   : > { %1685 = vmatpush3.bf16.msra.mxu0 %v1737_v21 }
 0x47e   : > { %1686 = vmatprep.subr.bf16.mxu0 %v1785_v2 }
 0x481   : > { %1687 = vmatpush3.bf16.msra.mxu0 %v1738_v32 }
 0x482   : > { %1688 = vmatprep.subr.bf16.mxu0 %v1785_v2  ;;  %v1559_v2 = vld [vmem:[%s2087_s12] ss:$0 sm:$0xff] }
 0x485   : > { %1689 = vmatpush3.bf16.msra.mxu0 %v1739_v33 }
 0x538   : > { %v1209_v7 = vpop.f32.mrf.mxu0 }
 0x539   : > { %v1210_v8 = vadd.f32 %v1549_v5, %v1209_v7 }
 0x53a   : > { %v1672_v9 = vpop.f32.mrf.mxu0 }
 0x53b   : > { %v1216_v10 = vadd.f32 %v1215_v6, %v1210_v8 }
 0x53c   : > { %v1212_v11 = vpop.f32.mrf.mxu0 }
 0x53d   : > { %v1219_v12 = vsel %vm579_vm1, %v1216_v10, 0.0 }
 0x53e   : > { %1220 = vadd.xlane.f32.xlu0 %v1219_v12  ;;  %v1673_v13 = vpop.f32.mrf.mxu0 }
 0x5c7   : > { %v1221_v14 = vpop.xlane.xlu0 %1220 }
 0x5c8   : > { %v1223_v15 = vmul.f32 0.03125, %v1221_v14 }
 0x5ca   : > { %v1224_v16 = vsub.f32 %v1216_v10, %v1223_v15 }
 0x5cc   : > { %v1225_v17 = vmul.f32 %v1224_v16, %v1224_v16 }
 0x5ce   : > { %v1226_v18 = vsel %vm579_vm1, %v1225_v17, 0.0 }
 0x5cf   : > { %1227 = vadd.xlane.f32.xlu1 %v1226_v18 }
 0x658   : > { %v1228_v22 = vpop.xlane.xlu1 %1227 }
 0x659   : > { %v1229_v23 = vmul.f32 0.03125, %v1228_v22 }
 0x65b   : > { %v1230_v24 = vadd.f32 1e-05, %v1229_v23 }
 0x65d   : > { %1756 = vrsqrt.f32 %v1230_v24 }
 0x66a   : > { %v1757_v25 = vpop.eup %1756 }
 0x66b   : > { %v1232_v27 = vmul.f32 %v1757_v25, %v1224_v16 }
 0x66d   : > { %v1239_v29 = vmul.f32 %v1553_v26, %v1232_v27 }
 0x66f   : > { %v1246_v30 = vadd.f32 %v1554_v28, %v1239_v29 }
 0x671   : > { %v1247_v31 = vpack.c.bf16 %v1246_v30, %v1246_v30 }
 0x673   : > { %1679 = vmatmul.mubr.msk.bf16.vlgmr.msra.gmra.mxu1 %vm579_vm1, %v1247_v31 }
 0x733   : > { %v1308_v35 = vpop.f32.mrf.mxu1 }
 0x734   : > { %v1309_v36 = vadd.f32 %v1555_v34, %v1308_v35 }
 0x735   : > { %v1680_v37 = vpop.f32.mrf.mxu1 }
 0x736   : > { %v1314_v38 = vmax.f32 %v1309_v36, 0.0 }
 0x737   : > { %v1311_v39 = vpop.f32.mrf.mxu1 }
 0x738   : > { %v1315_v40 = vpack.c.bf16 %v1314_v38, %v1314_v38 }
 0x739   : > { %v1681_v41 = vpop.f32.mrf.mxu1 }
 0x73a   : > { %1691 = vmatmul.mubr.msk.bf16.vlgmr.msra.gmra.mxu0 %vm1355_vm6, %v1315_v40 }
 0x7fa   : > { %v1393_v42 = vpop.f32.mrf.mxu0 }
 0x7fb   : > { %v1394_v43 = vadd.f32 %v1559_v2, %v1393_v42 }
 0x7fc   : > { %v1692_v44 = vpop.f32.mrf.mxu0 }
 0x7fd   : > { %v1399_v45 = vadd.f32 %v1394_v43, %v1246_v30 }
 0x7fe   : > { %v1396_v46 = vpop.f32.mrf.mxu0 }
 0x7ff   : > { %v1402_v47 = vsel %vm579_vm1, %v1399_v45, 0.0 }
 0x800   : > { %1403 = vadd.xlane.f32.xlu0 %v1402_v47  ;;  %v1693_v48 = vpop.f32.mrf.mxu0 }
 0x889   : > { %v1404_v49 = vpop.xlane.xlu0 %1403 }
 0x88a   : > { %v1405_v50 = vmul.f32 0.03125, %v1404_v49 }
 0x88c   : > { %v1406_v51 = vsub.f32 %v1399_v45, %v1405_v50 }
 0x88e   : > { %v1407_v52 = vmul.f32 %v1406_v51, %v1406_v51 }
 0x890   : > { %v1408_v53 = vsel %vm579_vm1, %v1407_v52, 0.0 }
 0x891   : > { %1409 = vadd.xlane.f32.xlu0 %v1408_v53 }
 0x91a   : > { %v1410_v54 = vpop.xlane.xlu0 %1409 }
 0x91b   : > { %v1411_v55 = vmul.f32 0.03125, %v1410_v54 }
 0x91d   : > { %v1412_v56 = vadd.f32 1e-05, %v1411_v55 }
 0x91f   : > { %1758 = vrsqrt.f32 %v1412_v56 }
 0x92c   : > { %v1759_v57 = vpop.eup %1758 }
 0x92d   : > { %v1414_v59 = vmul.f32 %v1759_v57, %v1406_v51 }
 0x92f   : > { %v1421_v61 = vmul.f32 %v1565_v58, %v1414_v59 }
 0x931   : > { %v1428_v62 = vadd.f32 %v1566_v60, %v1421_v61 }
 0x933   : > { %v1429_v63 = vpack.c.bf16 %v1428_v62, %v1428_v62 }
 0x935   : > { %1431 = vst.msk [vmem:[%s551_s26] sm:$0xf] %vm1430_vm7, %v1429_v63 }
 0x936 PF: > { %s25_s20 = sadd.s32 1, %s1782_s20   ;;  %s2091_s18 = smov %s1778_s19 }
 0x937   : > { %p22_p5 = scmp.ge.s32.totalorder %s25_s20, 4   ;;  %s2092_s19 = smov %s2094_s21 }
 0x939   :  { %24 = sbr.rel (!%p22_p5) target bundleno = 2 (0x2), region = 116 }

</bundles_post_ra>
